<compile_context>
chip_gen: v7x
topology: tpu7x:2x2x1
jax: 0.10.0
libtpu: 0.0.40
codegen_flags: <defaults>
</compile_context>

<pallas_src>
import numpy as np
import jax
import jax.numpy as jnp
from jax import lax
from jax.experimental import pallas as pl
from jax.experimental.pallas import tpu as pltpu


def _dotT(a, b):
    # a: (n, X), b: (n, Y) -> (X, Y), contracting the shared leading axis (a^T @ b).
    return lax.dot_general(a, b, (((0,), (0,)), ((), ())),
                           preferred_element_type=jnp.float32)


def _dot_rt(a, b):
    # a: (X, k), b: (Y, k) -> (X, Y)  == a @ b^T
    return lax.dot_general(a, b, (((1,), (1,)), ((), ())),
                           preferred_element_type=jnp.float32)


def _dot(a, b):
    return jnp.dot(a, b, preferred_element_type=jnp.float32)


def _affinity_kernel(f1_ref, f2_ref, u1_ref, u2_ref,
                     g1_ref, h1_ref, g2_ref, h2_ref,
                     st_ref, dt_ref, r2_ref, r1_ref, c2_ref, c1_ref,
                     m_ref):
    """Per-batch fused kernel:
       M = diag(vec Mp) + kron(G2,G1) @ diag(vec Me) @ kron(H2,H1)^T,
       with Me/Mp, vec(.) and both Kronecker factors built entirely in VMEM."""
    f1 = f1_ref[0]
    f2 = f2_ref[0]
    u1 = u1_ref[0]
    u2 = u2_ref[0]
    # 0/1 incidence data is shipped as bf16 (exact); upcast once for f32 MXU matmuls.
    g1 = g1_ref[0].astype(jnp.float32)
    h1 = h1_ref[0].astype(jnp.float32)
    g2 = g2_ref[0].astype(jnp.float32)
    h2 = h2_ref[0].astype(jnp.float32)
    st = st_ref[...]   # (la1 + la2)^T  (relu'd & transposed in the wrapper, loaded once)
    dt = dt_ref[...]   # (la1 - la2)^T
    r2 = r2_ref[...]   # (N^2, N)  R2[r, p] = [p == r // N]
    r1 = r1_ref[...]   # (N^2, N)  R1[r, p] = [p == r %  N]
    c2 = c2_ref[...]   # (E, E^2)  C2[e, k] = [e == k // E]
    c1 = c1_ref[...]   # (E, E^2)  C1[e, k] = [e == k %  E]

    # --- edge features (matmul form of concat_features): X = [G1^T F1 | H1^T F1], Y likewise ---
    xg = _dotT(g1, f1)                      # (E, D)
    xh = _dotT(h1, f1)
    yg = _dotT(g2, f2)
    yh = _dotT(h2, f2)

    # --- bilinear edge affinity via symmetric-params identity (4 matmuls instead of 6) ---
    sx = xg + xh
    dx = xg - xh
    sy = yg + yh
    dy = yg - yh
    # MeT[e2, e1] = Me[e1, e2];  Me = X @ [[la1, la2], [la2, la1]] @ Y^T
    met = 0.5 * (_dot_rt(_dot(sy, st), sx) + _dot_rt(_dot(dy, dt), dx))   # (E, E)

    # --- node affinity ---
    mp = _dot_rt(u1, u2)                    # (N, N)

    # --- build KG (pre-scaled by column-major vec(Me)) and KH in VMEM with 0/1 expansion matmuls ---
    # KG[r, k] = G2[r//N, k//E] * G1[r%N, k%E],  vme[k] = Me[k%E, k//E] = MeT[k//E, k%E]
    w = c2 * _dot(met, c1)                              # (E, E^2): [e2,k] = [e2==k//E]*MeT[e2,k%E]
    kg_scaled = _dot(r2, _dot(g2, w)) * _dot(r1, _dot(g1, c1))    # (N^2, E^2) == KG * vme
    kh = _dot(r2, _dot(h2, c2)) * _dot(r1, _dot(h1, c1))          # (N^2, E^2) == KH

    # edge part: (KG * vec(Me)) @ KH^T == KG @ diag(vec Me) @ KH^T
    edge = _dot_rt(kg_scaled, kh)                        # (N^2, N^2)

    # node part: diag(vec Mp);  vec(Mp)[r] = Mp[r%N, r//N]
    node_vals = _dot_rt(_dot(r1, mp), r2)                # [r, c] = Mp[r%N, c//N]
    n2 = edge.shape[0]
    rr = lax.broadcasted_iota(jnp.int32, (n2, n2), 0)
    cc = lax.broadcasted_iota(jnp.int32, (n2, n2), 1)
    m_ref[0] = edge + jnp.where(rr == cc, node_vals, 0.0)


def affinity_forward(F1, F2, U1, U2, G1, G2, H1, H2, mask, lam1, lam2):
    B, N, D = F1.shape
    E = G1.shape[-1]
    DU = U1.shape[-1]
    del mask  # valid-node info is already encoded by the zero-padded G/H columns

    # Hoisted parameter prep: relu + symmetric/antisymmetric combination, transposed because the
    # kernel produces Me^T directly (column-major vec without any in-kernel transpose).
    la1 = jax.nn.relu(lam1)
    la2 = jax.nn.relu(lam2)
    st = (la1 + la2).T
    dt = (la1 - la2).T

    # Constant 0/1 expansion matrices for in-kernel Kronecker construction (no HBM KG/KH).
    r_idx = np.arange(N * N)
    R2n = (r_idx[:, None] // N == np.arange(N)[None, :]).astype(np.float32)   # (N^2, N)
    R1n = (r_idx[:, None] % N == np.arange(N)[None, :]).astype(np.float32)    # (N^2, N)
    k_idx = np.arange(E * E)
    C2e = (np.arange(E)[:, None] == k_idx[None, :] // E).astype(np.float32)   # (E, E^2)
    C1e = (np.arange(E)[:, None] == k_idx[None, :] % E).astype(np.float32)    # (E, E^2)
    R2n = jnp.asarray(R2n)
    R1n = jnp.asarray(R1n)
    C2e = jnp.asarray(C2e)
    C1e = jnp.asarray(C1e)

    # 0/1 incidence matrices in bf16: half the DMA bytes, bit-exact.
    as_bf16 = lambda x: x.astype(jnp.bfloat16)

    def bspec(shape):
        return pl.BlockSpec((1,) + shape, lambda b: (b, 0, 0))

    def shared(shape):
        return pl.BlockSpec(shape, lambda b: (0, 0))

    M = pl.pallas_call(
        _affinity_kernel,
        out_shape=jax.ShapeDtypeStruct((B, N * N, N * N), jnp.float32),
        grid=(B,),
        in_specs=[bspec((N, D)), bspec((N, D)),
                  bspec((N, DU)), bspec((N, DU)),
                  bspec((N, E)), bspec((N, E)), bspec((N, E)), bspec((N, E)),
                  shared((D, D)), shared((D, D)),
                  shared((N * N, N)), shared((N * N, N)),
                  shared((E, E * E)), shared((E, E * E))],
        out_specs=bspec((N * N, N * N)),
        compiler_params=pltpu.CompilerParams(
            dimension_semantics=("parallel",),          # shards batch across v7x's 2 TensorCores
            vmem_limit_bytes=32 * 1024 * 1024),
    )(F1, F2, U1, U2,
      as_bf16(G1), as_bf16(H1), as_bf16(G2), as_bf16(H2),
      st, dt, R2n, R1n, C2e, C1e)
    return M


def reference_forward(F1, F2, U1, U2, G1, G2, H1, H2, mask, lam1, lam2):
    """Pure-JAX reference (same math as the torch module with factorized affinity)."""
    B, N, _ = F1.shape
    E = G1.shape[-1]
    la1 = jax.nn.relu(lam1); la2 = jax.nn.relu(lam2)
    X = jnp.concatenate([jnp.einsum('bne,bnd->bed', G1, F1),
                         jnp.einsum('bne,bnd->bed', H1, F1)], axis=-1)
    Y = jnp.concatenate([jnp.einsum('bne,bnd->bed', G2, F2),
                         jnp.einsum('bne,bnd->bed', H2, F2)], axis=-1)
    params = jnp.block([[la1, la2], [la2, la1]])
    Me = jnp.einsum('bec,cf,bgf->beg', X, params, Y)
    Mp = jnp.einsum('bnd,bmd->bnm', U1, U2)
    KG = jnp.einsum('bpc,bqa->bpqca', G2, G1).reshape(B, N * N, E * E)
    KH = jnp.einsum('bpc,bqa->bpqca', H2, H1).reshape(B, N * N, E * E)
    vme = jnp.swapaxes(Me, 1, 2).reshape(B, E * E)
    vmp = jnp.swapaxes(Mp, 1, 2).reshape(B, N * N)
    edge = jnp.einsum('bre,be,bce->brc', KG, vme, KH)
    node = jax.vmap(jnp.diag)(vmp)
    return edge + node


if __name__ == "__main__":
    B, N, E, D, DU = 2, 4, 12, 32, 16
    key = jax.random.PRNGKey(0)
    ks = jax.random.split(key, 6)

    F1 = jax.random.normal(ks[0], (B, N, D), jnp.float32)
    F2 = jax.random.normal(ks[1], (B, N, D), jnp.float32)
    U1 = jax.random.normal(ks[2], (B, N, DU), jnp.float32)
    U2 = jax.random.normal(ks[3], (B, N, DU), jnp.float32)

    # Build valid incidence matrices (one source and one target per edge column, ordered (i, j)).
    num_nodes = [4, 3]
    G1 = np.zeros((B, N, E), np.float32); H1 = np.zeros((B, N, E), np.float32)
    G2 = np.zeros((B, N, E), np.float32); H2 = np.zeros((B, N, E), np.float32)
    mask = np.zeros((B, N), np.float32)
    for b in range(B):
        nn_ = num_nodes[b]
        mask[b, :nn_] = 1.0
        e = 0
        for i in range(nn_):
            for j in range(nn_):
                if i != j and e < E:
                    G1[b, i, e] = 1.0; H1[b, j, e] = 1.0
                    G2[b, i, e] = 1.0; H2[b, j, e] = 1.0
                    e += 1
    G1 = jnp.asarray(G1); H1 = jnp.asarray(H1)
    G2 = jnp.asarray(G2); H2 = jnp.asarray(H2)
    mask = jnp.asarray(mask)

    # Deterministic parameter init (reset_parameters): U(-stdv, stdv) + I/2, stdv = 1/sqrt(2D).
    stdv = 1.0 / np.sqrt(2.0 * D)
    lam1 = jax.random.uniform(ks[4], (D, D), jnp.float32, -stdv, stdv) + jnp.eye(D, dtype=jnp.float32) / 2.0
    lam2 = jax.random.uniform(ks[5], (D, D), jnp.float32, -stdv, stdv) + jnp.eye(D, dtype=jnp.float32) / 2.0

    M = affinity_forward(F1, F2, U1, U2, G1, G2, H1, H2, mask, lam1, lam2)
    M = jax.block_until_ready(M)

    M_ref = reference_forward(F1, F2, U1, U2, G1, G2, H1, H2, mask, lam1, lam2)
    assert M.shape == (B, N * N, N * N)
    np.testing.assert_allclose(np.asarray(M), np.asarray(M_ref), rtol=2e-2, atol=2e-2)
    print("KERNEL_OK")
</pallas_src>

<mosaic_0001>
module attributes {stable_mosaic.version = 11 : i64} {
  func.func @_affinity_kernel(%arg0: i32, %arg1: memref<1x4x32xf32, #tpu.memory_space<vmem>>, %arg2: memref<1x4x32xf32, #tpu.memory_space<vmem>>, %arg3: memref<1x4x16xf32, #tpu.memory_space<vmem>>, %arg4: memref<1x4x16xf32, #tpu.memory_space<vmem>>, %arg5: memref<1x4x12xbf16, #tpu.memory_space<vmem>>, %arg6: memref<1x4x12xbf16, #tpu.memory_space<vmem>>, %arg7: memref<1x4x12xbf16, #tpu.memory_space<vmem>>, %arg8: memref<1x4x12xbf16, #tpu.memory_space<vmem>>, %arg9: memref<32x32xf32, #tpu.memory_space<vmem>>, %arg10: memref<32x32xf32, #tpu.memory_space<vmem>>, %arg11: memref<16x4xf32, #tpu.memory_space<vmem>>, %arg12: memref<16x4xf32, #tpu.memory_space<vmem>>, %arg13: memref<12x144xf32, #tpu.memory_space<vmem>>, %arg14: memref<12x144xf32, #tpu.memory_space<vmem>>, %arg15: memref<1x16x16xf32, #tpu.memory_space<vmem>>) attributes {dimension_semantics = [#tpu.dimension_semantics<parallel>], iteration_bounds = array<i64: 2>, scalar_prefetch = 0 : i64, scratch_operands = 0 : i64, tpu.core_type = #tpu.core_type<tc>, window_params = [{transform_indices = @transform_0, window_bounds = array<i64: 1, 4, 32>}, {transform_indices = @transform_1, window_bounds = array<i64: 1, 4, 32>}, {transform_indices = @transform_2, window_bounds = array<i64: 1, 4, 16>}, {transform_indices = @transform_3, window_bounds = array<i64: 1, 4, 16>}, {transform_indices = @transform_4, window_bounds = array<i64: 1, 4, 12>}, {transform_indices = @transform_5, window_bounds = array<i64: 1, 4, 12>}, {transform_indices = @transform_6, window_bounds = array<i64: 1, 4, 12>}, {transform_indices = @transform_7, window_bounds = array<i64: 1, 4, 12>}, {pipeline_mode = #tpu.pipeline_mode<synchronous>, transform_indices = @transform_8, window_bounds = array<i64: 32, 32>}, {pipeline_mode = #tpu.pipeline_mode<synchronous>, transform_indices = @transform_9, window_bounds = array<i64: 32, 32>}, {pipeline_mode = #tpu.pipeline_mode<synchronous>, transform_indices = @transform_10, window_bounds = array<i64: 16, 4>}, {pipeline_mode = #tpu.pipeline_mode<synchronous>, transform_indices = @transform_11, window_bounds = array<i64: 16, 4>}, {pipeline_mode = #tpu.pipeline_mode<synchronous>, transform_indices = @transform_12, window_bounds = array<i64: 12, 144>}, {pipeline_mode = #tpu.pipeline_mode<synchronous>, transform_indices = @transform_13, window_bounds = array<i64: 12, 144>}, {transform_indices = @transform_14, window_bounds = array<i64: 1, 16, 16>}]} {
    %c0 = arith.constant 0 : index
    %c0_0 = arith.constant 0 : index
    %c0_1 = arith.constant 0 : index
    %0 = vector.load %arg1[%c0, %c0_0, %c0_1] : memref<1x4x32xf32, #tpu.memory_space<vmem>>, vector<1x4x32xf32>
    %1 = vector.shape_cast %0 : vector<1x4x32xf32> to vector<4x32xf32>
    %c0_2 = arith.constant 0 : index
    %c0_3 = arith.constant 0 : index
    %c0_4 = arith.constant 0 : index
    %2 = vector.load %arg2[%c0_2, %c0_3, %c0_4] : memref<1x4x32xf32, #tpu.memory_space<vmem>>, vector<1x4x32xf32>
    %3 = vector.shape_cast %2 : vector<1x4x32xf32> to vector<4x32xf32>
    %c0_5 = arith.constant 0 : index
    %c0_6 = arith.constant 0 : index
    %c0_7 = arith.constant 0 : index
    %4 = vector.load %arg3[%c0_5, %c0_6, %c0_7] : memref<1x4x16xf32, #tpu.memory_space<vmem>>, vector<1x4x16xf32>
    %5 = vector.shape_cast %4 : vector<1x4x16xf32> to vector<4x16xf32>
    %c0_8 = arith.constant 0 : index
    %c0_9 = arith.constant 0 : index
    %c0_10 = arith.constant 0 : index
    %6 = vector.load %arg4[%c0_8, %c0_9, %c0_10] : memref<1x4x16xf32, #tpu.memory_space<vmem>>, vector<1x4x16xf32>
    %7 = vector.shape_cast %6 : vector<1x4x16xf32> to vector<4x16xf32>
    %c0_11 = arith.constant 0 : index
    %c0_12 = arith.constant 0 : index
    %c0_13 = arith.constant 0 : index
    %8 = vector.load %arg5[%c0_11, %c0_12, %c0_13] : memref<1x4x12xbf16, #tpu.memory_space<vmem>>, vector<1x4x12xbf16>
    %9 = vector.shape_cast %8 : vector<1x4x12xbf16> to vector<4x12xbf16>
    %10 = arith.extf %9 : vector<4x12xbf16> to vector<4x12xf32>
    %c0_14 = arith.constant 0 : index
    %c0_15 = arith.constant 0 : index
    %c0_16 = arith.constant 0 : index
    %11 = vector.load %arg6[%c0_14, %c0_15, %c0_16] : memref<1x4x12xbf16, #tpu.memory_space<vmem>>, vector<1x4x12xbf16>
    %12 = vector.shape_cast %11 : vector<1x4x12xbf16> to vector<4x12xbf16>
    %13 = arith.extf %12 : vector<4x12xbf16> to vector<4x12xf32>
    %c0_17 = arith.constant 0 : index
    %c0_18 = arith.constant 0 : index
    %c0_19 = arith.constant 0 : index
    %14 = vector.load %arg7[%c0_17, %c0_18, %c0_19] : memref<1x4x12xbf16, #tpu.memory_space<vmem>>, vector<1x4x12xbf16>
    %15 = vector.shape_cast %14 : vector<1x4x12xbf16> to vector<4x12xbf16>
    %16 = arith.extf %15 : vector<4x12xbf16> to vector<4x12xf32>
    %c0_20 = arith.constant 0 : index
    %c0_21 = arith.constant 0 : index
    %c0_22 = arith.constant 0 : index
    %17 = vector.load %arg8[%c0_20, %c0_21, %c0_22] : memref<1x4x12xbf16, #tpu.memory_space<vmem>>, vector<1x4x12xbf16>
    %18 = vector.shape_cast %17 : vector<1x4x12xbf16> to vector<4x12xbf16>
    %19 = arith.extf %18 : vector<4x12xbf16> to vector<4x12xf32>
    %c0_23 = arith.constant 0 : index
    %c0_24 = arith.constant 0 : index
    %20 = vector.load %arg9[%c0_23, %c0_24] : memref<32x32xf32, #tpu.memory_space<vmem>>, vector<32x32xf32>
    %c0_25 = arith.constant 0 : index
    %c0_26 = arith.constant 0 : index
    %21 = vector.load %arg10[%c0_25, %c0_26] : memref<32x32xf32, #tpu.memory_space<vmem>>, vector<32x32xf32>
    %c0_27 = arith.constant 0 : index
    %c0_28 = arith.constant 0 : index
    %22 = vector.load %arg11[%c0_27, %c0_28] : memref<16x4xf32, #tpu.memory_space<vmem>>, vector<16x4xf32>
    %c0_29 = arith.constant 0 : index
    %c0_30 = arith.constant 0 : index
    %23 = vector.load %arg12[%c0_29, %c0_30] : memref<16x4xf32, #tpu.memory_space<vmem>>, vector<16x4xf32>
    %c0_31 = arith.constant 0 : index
    %c0_32 = arith.constant 0 : index
    %24 = vector.load %arg13[%c0_31, %c0_32] : memref<12x144xf32, #tpu.memory_space<vmem>>, vector<12x144xf32>
    %c0_33 = arith.constant 0 : index
    %c0_34 = arith.constant 0 : index
    %25 = vector.load %arg14[%c0_33, %c0_34] : memref<12x144xf32, #tpu.memory_space<vmem>>, vector<12x144xf32>
    %cst = arith.constant dense<0.000000e+00> : vector<12x32xf32>
    %26 = tpu.matmul %10, %1, %cst {dimension_numbers = #tpu.dot_dimension_numbers<[0], [0], [1], [1], [0, 1, 1, 1], [], []>} : vector<4x12xf32>, vector<4x32xf32>, vector<12x32xf32> -> vector<12x32xf32>
    %cst_35 = arith.constant dense<0.000000e+00> : vector<12x32xf32>
    %27 = tpu.matmul %13, %1, %cst_35 {dimension_numbers = #tpu.dot_dimension_numbers<[0], [0], [1], [1], [0, 1, 1, 1], [], []>} : vector<4x12xf32>, vector<4x32xf32>, vector<12x32xf32> -> vector<12x32xf32>
    %cst_36 = arith.constant dense<0.000000e+00> : vector<12x32xf32>
    %28 = tpu.matmul %16, %3, %cst_36 {dimension_numbers = #tpu.dot_dimension_numbers<[0], [0], [1], [1], [0, 1, 1, 1], [], []>} : vector<4x12xf32>, vector<4x32xf32>, vector<12x32xf32> -> vector<12x32xf32>
    %cst_37 = arith.constant dense<0.000000e+00> : vector<12x32xf32>
    %29 = tpu.matmul %19, %3, %cst_37 {dimension_numbers = #tpu.dot_dimension_numbers<[0], [0], [1], [1], [0, 1, 1, 1], [], []>} : vector<4x12xf32>, vector<4x32xf32>, vector<12x32xf32> -> vector<12x32xf32>
    %30 = arith.addf %26, %27 : vector<12x32xf32>
    %31 = arith.subf %26, %27 : vector<12x32xf32>
    %32 = arith.addf %28, %29 : vector<12x32xf32>
    %33 = arith.subf %28, %29 : vector<12x32xf32>
    %cst_38 = arith.constant dense<0.000000e+00> : vector<12x32xf32>
    %34 = tpu.matmul %32, %20, %cst_38 {dimension_numbers = #tpu.dot_dimension_numbers<[1], [0], [0], [1], [0, 0, 1, 1], [], []>} : vector<12x32xf32>, vector<32x32xf32>, vector<12x32xf32> -> vector<12x32xf32>
    %cst_39 = arith.constant dense<0.000000e+00> : vector<12x12xf32>
    %35 = tpu.matmul %34, %30, %cst_39 {dimension_numbers = #tpu.dot_dimension_numbers<[1], [1], [0], [0], [0, 0, 1, 0], [], []>} : vector<12x32xf32>, vector<12x32xf32>, vector<12x12xf32> -> vector<12x12xf32>
    %cst_40 = arith.constant dense<0.000000e+00> : vector<12x32xf32>
    %36 = tpu.matmul %33, %21, %cst_40 {dimension_numbers = #tpu.dot_dimension_numbers<[1], [0], [0], [1], [0, 0, 1, 1], [], []>} : vector<12x32xf32>, vector<32x32xf32>, vector<12x32xf32> -> vector<12x32xf32>
    %cst_41 = arith.constant dense<0.000000e+00> : vector<12x12xf32>
    %37 = tpu.matmul %36, %31, %cst_41 {dimension_numbers = #tpu.dot_dimension_numbers<[1], [1], [0], [0], [0, 0, 1, 0], [], []>} : vector<12x32xf32>, vector<12x32xf32>, vector<12x12xf32> -> vector<12x12xf32>
    %38 = arith.addf %35, %37 : vector<12x12xf32>
    %cst_42 = arith.constant 5.000000e-01 : f32
    %39 = vector.broadcast %cst_42 : f32 to vector<12x12xf32>
    %40 = arith.mulf %39, %38 : vector<12x12xf32>
    %cst_43 = arith.constant dense<0.000000e+00> : vector<4x4xf32>
    %41 = tpu.matmul %5, %7, %cst_43 {dimension_numbers = #tpu.dot_dimension_numbers<[1], [1], [0], [0], [0, 0, 1, 0], [], []>} : vector<4x16xf32>, vector<4x16xf32>, vector<4x4xf32> -> vector<4x4xf32>
    %cst_44 = arith.constant dense<0.000000e+00> : vector<12x144xf32>
    %42 = tpu.matmul %40, %25, %cst_44 {dimension_numbers = #tpu.dot_dimension_numbers<[1], [0], [0], [1], [0, 0, 1, 1], [], []>} : vector<12x12xf32>, vector<12x144xf32>, vector<12x144xf32> -> vector<12x144xf32>
    %43 = arith.mulf %24, %42 : vector<12x144xf32>
    %cst_45 = arith.constant dense<0.000000e+00> : vector<4x144xf32>
    %44 = tpu.matmul %16, %43, %cst_45 {dimension_numbers = #tpu.dot_dimension_numbers<[1], [0], [0], [1], [0, 0, 1, 1], [], []>} : vector<4x12xf32>, vector<12x144xf32>, vector<4x144xf32> -> vector<4x144xf32>
    %cst_46 = arith.constant dense<0.000000e+00> : vector<16x144xf32>
    %45 = tpu.matmul %22, %44, %cst_46 {dimension_numbers = #tpu.dot_dimension_numbers<[1], [0], [0], [1], [0, 0, 1, 1], [], []>} : vector<16x4xf32>, vector<4x144xf32>, vector<16x144xf32> -> vector<16x144xf32>
    %cst_47 = arith.constant dense<0.000000e+00> : vector<4x144xf32>
    %46 = tpu.matmul %10, %25, %cst_47 {dimension_numbers = #tpu.dot_dimension_numbers<[1], [0], [0], [1], [0, 0, 1, 1], [], []>} : vector<4x12xf32>, vector<12x144xf32>, vector<4x144xf32> -> vector<4x144xf32>
    %cst_48 = arith.constant dense<0.000000e+00> : vector<16x144xf32>
    %47 = tpu.matmul %23, %46, %cst_48 {dimension_numbers = #tpu.dot_dimension_numbers<[1], [0], [0], [1], [0, 0, 1, 1], [], []>} : vector<16x4xf32>, vector<4x144xf32>, vector<16x144xf32> -> vector<16x144xf32>
    %48 = arith.mulf %45, %47 : vector<16x144xf32>
    %cst_49 = arith.constant dense<0.000000e+00> : vector<4x144xf32>
    %49 = tpu.matmul %19, %24, %cst_49 {dimension_numbers = #tpu.dot_dimension_numbers<[1], [0], [0], [1], [0, 0, 1, 1], [], []>} : vector<4x12xf32>, vector<12x144xf32>, vector<4x144xf32> -> vector<4x144xf32>
    %cst_50 = arith.constant dense<0.000000e+00> : vector<16x144xf32>
    %50 = tpu.matmul %22, %49, %cst_50 {dimension_numbers = #tpu.dot_dimension_numbers<[1], [0], [0], [1], [0, 0, 1, 1], [], []>} : vector<16x4xf32>, vector<4x144xf32>, vector<16x144xf32> -> vector<16x144xf32>
    %cst_51 = arith.constant dense<0.000000e+00> : vector<4x144xf32>
    %51 = tpu.matmul %13, %25, %cst_51 {dimension_numbers = #tpu.dot_dimension_numbers<[1], [0], [0], [1], [0, 0, 1, 1], [], []>} : vector<4x12xf32>, vector<12x144xf32>, vector<4x144xf32> -> vector<4x144xf32>
    %cst_52 = arith.constant dense<0.000000e+00> : vector<16x144xf32>
    %52 = tpu.matmul %23, %51, %cst_52 {dimension_numbers = #tpu.dot_dimension_numbers<[1], [0], [0], [1], [0, 0, 1, 1], [], []>} : vector<16x4xf32>, vector<4x144xf32>, vector<16x144xf32> -> vector<16x144xf32>
    %53 = arith.mulf %50, %52 : vector<16x144xf32>
    %cst_53 = arith.constant dense<0.000000e+00> : vector<16x16xf32>
    %54 = tpu.matmul %48, %53, %cst_53 {dimension_numbers = #tpu.dot_dimension_numbers<[1], [1], [0], [0], [0, 0, 1, 0], [], []>} : vector<16x144xf32>, vector<16x144xf32>, vector<16x16xf32> -> vector<16x16xf32>
    %cst_54 = arith.constant dense<0.000000e+00> : vector<16x4xf32>
    %55 = tpu.matmul %23, %41, %cst_54 {dimension_numbers = #tpu.dot_dimension_numbers<[1], [0], [0], [1], [0, 0, 1, 1], [], []>} : vector<16x4xf32>, vector<4x4xf32>, vector<16x4xf32> -> vector<16x4xf32>
    %cst_55 = arith.constant dense<0.000000e+00> : vector<16x16xf32>
    %56 = tpu.matmul %55, %22, %cst_55 {dimension_numbers = #tpu.dot_dimension_numbers<[1], [1], [0], [0], [0, 0, 1, 0], [], []>} : vector<16x4xf32>, vector<16x4xf32>, vector<16x16xf32> -> vector<16x16xf32>
    %57 = tpu.iota {dimensions = array<i32: 0>} : vector<16x16xi32>
    %58 = tpu.iota {dimensions = array<i32: 1>} : vector<16x16xi32>
    %59 = arith.cmpi eq, %57, %58 : vector<16x16xi32>
    %cst_56 = arith.constant 0.000000e+00 : f32
    %60 = vector.broadcast %cst_56 : f32 to vector<16x16xf32>
    %61 = arith.select %59, %56, %60 : vector<16x16xi1>, vector<16x16xf32>
    %62 = arith.addf %54, %61 : vector<16x16xf32>
    %c0_57 = arith.constant 0 : index
    %c0_58 = arith.constant 0 : index
    %c0_59 = arith.constant 0 : index
    %63 = vector.load %arg15[%c0_57, %c0_58, %c0_59] : memref<1x16x16xf32, #tpu.memory_space<vmem>>, vector<1x16x16xf32>
    %64 = vector.shape_cast %63 : vector<1x16x16xf32> to vector<16x16xf32>
    %65 = vector.shape_cast %62 : vector<16x16xf32> to vector<1x16x16xf32>
    tpu.vector_store %arg15[%c0_57, %c0_58, %c0_59], %65 {strides = array<i32>} : memref<1x16x16xf32, #tpu.memory_space<vmem>>, vector<1x16x16xf32>,
    return
  }
  func.func @transform_0(%arg0: i32) -> (i32, i32, i32) {
    %c0_i32 = arith.constant 0 : i32
    %c0_i32_0 = arith.constant 0 : i32
    %c0_i32_1 = arith.constant 0 : i32
    return %arg0, %c0_i32, %c0_i32_0 : i32, i32, i32
  }
  func.func @transform_1(%arg0: i32) -> (i32, i32, i32) {
    %c0_i32 = arith.constant 0 : i32
    %c0_i32_0 = arith.constant 0 : i32
    %c0_i32_1 = arith.constant 0 : i32
    return %arg0, %c0_i32, %c0_i32_0 : i32, i32, i32
  }
  func.func @transform_2(%arg0: i32) -> (i32, i32, i32) {
    %c0_i32 = arith.constant 0 : i32
    %c0_i32_0 = arith.constant 0 : i32
    %c0_i32_1 = arith.constant 0 : i32
    return %arg0, %c0_i32, %c0_i32_0 : i32, i32, i32
  }
  func.func @transform_3(%arg0: i32) -> (i32, i32, i32) {
    %c0_i32 = arith.constant 0 : i32
    %c0_i32_0 = arith.constant 0 : i32
    %c0_i32_1 = arith.constant 0 : i32
    return %arg0, %c0_i32, %c0_i32_0 : i32, i32, i32
  }
  func.func @transform_4(%arg0: i32) -> (i32, i32, i32) {
    %c0_i32 = arith.constant 0 : i32
    %c0_i32_0 = arith.constant 0 : i32
    %c0_i32_1 = arith.constant 0 : i32
    return %arg0, %c0_i32, %c0_i32_0 : i32, i32, i32
  }
  func.func @transform_5(%arg0: i32) -> (i32, i32, i32) {
    %c0_i32 = arith.constant 0 : i32
    %c0_i32_0 = arith.constant 0 : i32
    %c0_i32_1 = arith.constant 0 : i32
    return %arg0, %c0_i32, %c0_i32_0 : i32, i32, i32
  }
  func.func @transform_6(%arg0: i32) -> (i32, i32, i32) {
    %c0_i32 = arith.constant 0 : i32
    %c0_i32_0 = arith.constant 0 : i32
    %c0_i32_1 = arith.constant 0 : i32
    return %arg0, %c0_i32, %c0_i32_0 : i32, i32, i32
  }
  func.func @transform_7(%arg0: i32) -> (i32, i32, i32) {
    %c0_i32 = arith.constant 0 : i32
    %c0_i32_0 = arith.constant 0 : i32
    %c0_i32_1 = arith.constant 0 : i32
    return %arg0, %c0_i32, %c0_i32_0 : i32, i32, i32
  }
  func.func @transform_8(%arg0: i32) -> (i32, i32) {
    %c0_i32 = arith.constant 0 : i32
    %c0_i32_0 = arith.constant 0 : i32
    %c0_i32_1 = arith.constant 0 : i32
    return %c0_i32, %c0_i32_0 : i32, i32
  }
  func.func @transform_9(%arg0: i32) -> (i32, i32) {
    %c0_i32 = arith.constant 0 : i32
    %c0_i32_0 = arith.constant 0 : i32
    %c0_i32_1 = arith.constant 0 : i32
    return %c0_i32, %c0_i32_0 : i32, i32
  }
  func.func @transform_10(%arg0: i32) -> (i32, i32) {
    %c0_i32 = arith.constant 0 : i32
    %c0_i32_0 = arith.constant 0 : i32
    %c0_i32_1 = arith.constant 0 : i32
    return %c0_i32, %c0_i32_0 : i32, i32
  }
  func.func @transform_11(%arg0: i32) -> (i32, i32) {
    %c0_i32 = arith.constant 0 : i32
    %c0_i32_0 = arith.constant 0 : i32
    %c0_i32_1 = arith.constant 0 : i32
    return %c0_i32, %c0_i32_0 : i32, i32
  }
  func.func @transform_12(%arg0: i32) -> (i32, i32) {
    %c0_i32 = arith.constant 0 : i32
    %c0_i32_0 = arith.constant 0 : i32
    %c0_i32_1 = arith.constant 0 : i32
    return %c0_i32, %c0_i32_0 : i32, i32
  }
  func.func @transform_13(%arg0: i32) -> (i32, i32) {
    %c0_i32 = arith.constant 0 : i32
    %c0_i32_0 = arith.constant 0 : i32
    %c0_i32_1 = arith.constant 0 : i32
    return %c0_i32, %c0_i32_0 : i32, i32
  }
  func.func @transform_14(%arg0: i32) -> (i32, i32, i32) {
    %c0_i32 = arith.constant 0 : i32
    %c0_i32_0 = arith.constant 0 : i32
    %c0_i32_1 = arith.constant 0 : i32
    return %arg0, %c0_i32, %c0_i32_0 : i32, i32, i32
  }
}

</mosaic_0001>

<bundles_post_ra>
// kernel: tpu_custom_call.1
= control target key start
LH: loop header
LB: loop body
LE: loop exit
PB: predicated region body
PF: predicated region fallthrough
CT: control target
= control target key end

     0   :  { %s4522_s0 = inlined_call_operand.hbm [shape: f32[2,4,32], index: 0, kind: input, shape index: {}]   ;;  %s4523_s1 = inlined_call_operand.hbm [shape: f32[2,4,32], index: 1, kind: input, shape index: {}]   ;;  %s4524_s2 = inlined_call_operand.hbm [shape: f32[2,4,16], index: 2, kind: input, shape index: {}]   ;;  %s4525_s3 = inlined_call_operand.hbm [shape: f32[2,4,16], index: 3, kind: input, shape index: {}]   ;;  %s4526_s4 = inlined_call_operand.hbm [shape: bf16[2,4,12], index: 4, kind: input, shape index: {}]   ;;  %s4527_s5 = inlined_call_operand.hbm [shape: bf16[2,4,12], index: 5, kind: input, shape index: {}]   ;;  %s4528_s6 = inlined_call_operand.hbm [shape: bf16[2,4,12], index: 6, kind: input, shape index: {}]   ;;  %s4529_s7 = inlined_call_operand.hbm [shape: bf16[2,4,12], index: 7, kind: input, shape index: {}]   ;;  %s4530_s8 = inlined_call_operand.vmem [shape: f32[32,32], index: 8, kind: input, shape index: {}]   ;;  %s4531_s9 = inlined_call_operand.vmem [shape: f32[32,32], index: 9, kind: input, shape index: {}]   ;;  %s4532_s10 = inlined_call_operand.vmem [shape: f32[16,4], index: 10, kind: input, shape index: {}]   ;;  %s4533_s11 = inlined_call_operand.vmem [shape: f32[16,4], index: 11, kind: input, shape index: {}]   ;;  %s4534_s12 = inlined_call_operand.hbm [shape: f32[12,144], index: 12, kind: input, shape index: {}]   ;;  %s4535_s13 = inlined_call_operand.hbm [shape: f32[12,144], index: 13, kind: input, shape index: {}]   ;;  %s4536_s14 = inlined_call_operand.hbm [shape: f32[2,16,16], index: 14, kind: output, shape index: {}]  }
   0x1   :  { %4565 = sst [smem:[#allocation35_spill]] %s4523_s1 }
   0x2   :  { %4566 = sst [smem:[#allocation36_spill]] %s4525_s3 }
   0x3   :  { %4567 = sst [smem:[#allocation37_spill]] %s4527_s5 }
   0x4   :  { %4568 = sst [smem:[#allocation38_spill]] %s4530_s8 }
   0x5   :  { %4569 = sst [smem:[#allocation39_spill]] %s4531_s9 }
   0x6   :  { %4570 = sst [smem:[#allocation40_spill]] %s4532_s10 }
   0x7   :  { %4571 = sst [smem:[#allocation41_spill]] %s4533_s11 }
   0x8   :  { %4572 = sst [smem:[#allocation42_spill]] %s4534_s12 }
   0x9   :  { %4573 = sst [smem:[#allocation43_spill]] %s4536_s14 }
   0xa   :  { %19 = vsyncpa [#allocation3], 0 }
   0xb   :  { %21 = vsyncpa [#allocation3 + $0x1], 0 }
   0xc   :  { %22 = vsyncpa [#allocation6], 0 }
   0xd   :  { %24 = vsyncpa [#allocation6 + $0x1], 0 }
   0xe   :  { %25 = vsyncpa [#allocation9], 0 }
   0xf   :  { %27 = vsyncpa [#allocation9 + $0x1], 0 }
  0x10   :  { %28 = vsyncpa [#allocation12], 0 }
  0x11   :  { %30 = vsyncpa [#allocation12 + $0x1], 0 }
  0x12   :  { %31 = vsyncpa [#allocation15], 0 }
  0x13   :  { %33 = vsyncpa [#allocation15 + $0x1], 0 }
  0x14   :  { %34 = vsyncpa [#allocation18], 0 }
  0x15   :  { %35 = vsyncpa [#allocation4], 0 }
  0x16   :  { %37 = vsyncpa [#allocation4 + $0x1], 0  ;;  %s3854_s29 = smov 0   ;;  %s3856_s30 = smov 0  }
  0x17   :  { %s3858_s15 = smov 0   ;;  %s3860_s16 = smov 0  }
  0x18 LB: > { %4574 = sst [smem:[#allocation28_spill]] %s3747_s29  ;;  %s3875_s17 = sadd.s32 4294967295, %s3759_s16   ;;  %s3759_s16 = sphi %s3860_s16, %s4632_s16   ;;  %s3755_s15 = sphi %s3858_s15, %s4634_s15   ;;  %s3751_s30 = sphi %s3856_s30, %s4636_s30   ;;  %s3747_s29 = sphi %s3854_s29, %s4635_s29  }
  0x19   : > { %4575 = sst [smem:[#allocation29_spill]] %s3755_s15  ;;  %s2947_s18 = sadd.s32 4294967294, %s3759_s16  }
  0x1a   : > { %4576 = sst [smem:[#allocation30_spill]] %s3875_s17  ;;  %p63_p0 = scmp.ne.s32.totalorder %s3751_s30, %s3747_s29 }
  0x1b   : > { %p4541_p1 = scmp.eq.s32.totalorder %s3875_s17, 0  ;;  %p401_p3 = scmp.eq.s32.totalorder %s2947_s18, 1 }
  0x1c   : > { %p2948_p5 = scmp.ge.s32.totalorder %s3759_s16, 1  ;;  %p408_p7 = scmp.lt.s32.totalorder %s3759_s16, 3 }
  0x1d   : > { %p3884_p4 = por %p4541_p1, %p63_p0  ;;  %p3889_p6 = por %p401_p3, %p63_p0 }
  0x1e   : > { %p3894_p8 = pnand %p2948_p5, %p408_p7  ;;  %s3761_s22 = smov [#allocation16]  }
  0x1f   : > { %s4577_s19 = scalar_select %p3884_p4, 1, 0 }
  0x20   : > { %s4578_s20 = scalar_select %p3889_p6, 1, 0 }
  0x21   : > { %s4580_s21 = scalar_select %p3894_p8, 1, 0 }
  0x22   : > { %4579 = sst [smem:[#allocation31_spill]] %s4578_s20  ;;  %s432_s23 = sshll.u32 %s3761_s22, 4  ;;  %s3898_s23 = int_to_ptr.vmem [resolvable:$true] %s432_s23 }
  0x23   : > { %p3266_p9 = pneg %p3894_p8  ;;  %s3910_s25 = sadd.s32 1, %s3759_s16  }
  0x24   : > { %4582 = sst [smem:[#allocation32_spill]] %s3910_s25  ;;  %s50_s26 = sadd.s32 1, %s3755_s15 }
  0x25   : > { %p3905_p11 = pnand %p3266_p9, %p4541_p1  ;;  %s47_s27 = ssub.s32 %s3759_s16, %s3910_s25 }
  0x26   : > { %s4583_s12 = sld [smem:[#allocation42_spill]] }
  0x27   : > { %s4581_s24 = scalar_select %p3905_p11, 1, 0 }
  0x28   : > { %p4551_p13 = pneg %p3905_p11 }
  0x2c   : > { %s3373_s22 = scalar_lea.hbm %s4583_s12, 512 }
  0x2d   : > { %p3374_p12 = scmp.ne.s32.totalorder %s4583_s12, %s3373_s22  ;;  %p3380_p5 = scmp.lt.u32.totalorder %s3373_s22, %s4583_s12 }
  0x2f   : > { %p3376_p0 = pnand %p4551_p13, %p3374_p12 }
  0x31   : > { %p3377_p3 = pneg %p3376_p0 }
  0x33   : > { %p3382_p7 = pnand %p3380_p5, %p3377_p3 }
  0x35   : > { %3385 = shalt.err (!%p3382_p7)
}
  0x36   : > { %s3386_s28 = scalar_lea.vmem %s3898_s23, 512  ;;  %p3394_p2 = scmp.lt.s32.totalorder %s3898_s23, %s3898_s23 }
  0x37   : > { %p3387_p9 = scmp.ne.s32.totalorder %s3898_s23, %s3386_s28  ;;  %p3395_p12 = scmp.lt.s32.totalorder %s3386_s28, %s3386_s28 }
  0x39   : > { %p3389_p10 = pnand %p3387_p9, %p4551_p13  ;;  %p3396_p0 = por %p3395_p12, %p3394_p2 }
  0x3b   : > { %p3390_p1 = pneg %p3389_p10 }
  0x3d   : > { %p3397_p6 = pnand %p3396_p0, %p3390_p1 }
  0x3f   : > { %3400 = shalt.err (!%p3397_p6)
}
  0x40   : > { %s4544_s11 = smov 256   ;;  %s4545_s14 = smov 16  }
  0x41   : > { %3269 = dma.hbm_to_vmem [thread:$0]  (!%p3905_p11), %s4583_s12, 512, %s3898_s23, [#allocation15], %s4544_s11, %s4544_s11, %s4545_s14  }
  0x42   : > { %p48_p1 = scmp.eq.s32.totalorder %s47_s27, 0  ;;  %p57_p2 = scmp.ne.s32.totalorder %s3755_s15, %s3751_s30 }
  0x43   : > { %p58_p6 = scmp.eq.s32.totalorder %s3759_s16, 0  ;;  %p3304_p10 = scmp.lt.s32.totalorder %s3759_s16, 2 }
  0x44   : > { %s3950_s18 = scalar_select %p48_p1, %s3755_s15, %s50_s26  }
  0x45   : > { %p59_p3 = por %p58_p6, %p57_p2  ;;  %p4585_p5 = scmp.eq.s32.totalorder %s3875_s17, 1 }
  0x46   : > { %4584 = sst [smem:[#allocation33_spill]] %s3950_s18  ;;  %s3959_s28 = sand.u32 1, %s3755_s15  }
  0x47   : > { %p3954_p7 = por %p4585_p5, %p57_p2  ;;  %s3962_s25 = sshll.u32 %s3759_s16, 6 }
  0x48   : > { %s3965_s29 = sshll.u32 %s3959_s28, 2  ;;  %p3967_p9 = pnand %p3304_p10, %p59_p3 }
  0x49   : > { %s4586_s22 = scalar_select %p3954_p7, 1, 0 }
  0x4a   : > { %s4588_s23 = scalar_select %p3967_p9, 1, 0 }
  0x4b   : > { %4587 = sst [smem:[#allocation34_spill]] %s4586_s22  ;;  %s3972_s26 = sand.u32 1, %s3759_s16  }
  0x4c   : > { %s4589_s1 = sld [smem:[#allocation35_spill]]  ;;  %s481_s14 = scalar_lea.vmem [#allocation5], %s3965_s29 }
  0x4d   : > { %s488_s12 = sshll.u32 %s481_s14, 4  ;;  %p3988_p0 = pneg %p3967_p9  ;;  %s3981_s12 = int_to_ptr.vmem [resolvable:$true] %s488_s12 }
  0x4f   : > { %s4590_s22 = scalar_select %p3988_p0, 1, 0 }
  0x52   : > { %s3978_s11 = scalar_lea.hbm %s4589_s1, %s3962_s25  ;;  %s3406_s10 = scalar_lea.hbm %s4589_s1, 128 }
  0x53   : > { %s3401_s15 = scalar_lea.hbm %s3978_s11, 64  ;;  %p3407_p6 = scmp.lt.u32.totalorder %s3978_s11, %s4589_s1 }
  0x54   : > { %p3402_p12 = scmp.ne.s32.totalorder %s3978_s11, %s3401_s15  ;;  %p3408_p10 = scmp.lt.u32.totalorder %s3406_s10, %s3401_s15 }
  0x55   : > { %p3410_p5 = scmp.lt.u32.totalorder %s3401_s15, %s3978_s11 }
  0x56   : > { %p3404_p1 = pnand %p3988_p0, %p3402_p12  ;;  %p3409_p3 = por %p3408_p10, %p3407_p6 }
  0x58   : > { %p3405_p2 = pneg %p3404_p1  ;;  %p3411_p13 = por %p3410_p5, %p3409_p3 }
  0x5a   : > { %p3412_p7 = pnand %p3411_p13, %p3405_p2 }
  0x5c   : > { %3415 = shalt.err (!%p3412_p7)
}
  0x5d   : > { %s3416_s18 = scalar_lea.vmem %s3981_s12, 64  ;;  %s3764_s27 = smov [#allocation5]  }
  0x5e   : > { %p3417_p12 = scmp.ne.s32.totalorder %s3981_s12, %s3416_s18  ;;  %s3421_s20 = sshll.u32 %s3764_s27, 4  ;;  %s3422_s20 = int_to_ptr.vmem [resolvable:$false] %s3421_s20 }
  0x5f   : > { %s3423_s9 = scalar_lea.vmem %s3422_s20, 128  ;;  %p3424_p8 = scmp.lt.s32.totalorder %s3981_s12, %s3422_s20 }
  0x60   : > { %p3419_p1 = pnand %p3417_p12, %p3988_p0  ;;  %p3425_p11 = scmp.lt.s32.totalorder %s3423_s9, %s3416_s18 }
  0x62   : > { %p3420_p4 = pneg %p3419_p1  ;;  %p3426_p6 = por %p3425_p11, %p3424_p8 }
  0x64   : > { %p3427_p10 = pnand %p3426_p6, %p3420_p4 }
  0x66   : > { %3430 = shalt.err (!%p3427_p10)
}
  0x67   : > { %s4591_s10 = scalar_lea.sflag [#allocation6], %s3972_s26  ;;  %s4592_s3 = sld [smem:[#allocation36_spill]] }
  0x68   : > { %3279 = dma.hbm_to_vmem [thread:$0]  (!%p3967_p9), %s3978_s11, 64, %s3981_s12, %s4591_s10  }
  0x69   : > { %s517_s27 = scalar_lea.vmem [#allocation8], %s3965_s29  ;;  %s4021_s9 = sshll.u32 %s3959_s28, 1 }
  0x6a   : > { %s524_s20 = sshll.u32 %s517_s27, 4  ;;  %s4026_s1 = sshll.u32 %s3759_s16, 5  ;;  %s4023_s20 = int_to_ptr.vmem [resolvable:$true] %s524_s20 }
  0x6b   : > { %s4560_s8 = scalar_lea.sflag [#allocation9], %s3972_s26 }
  0x6d   : > { %s4017_s18 = scalar_lea.hbm %s4592_s3, %s3962_s25  ;;  %s3436_s10 = scalar_lea.hbm %s4592_s3, 128 }
  0x6e   : > { %s3431_s17 = scalar_lea.hbm %s4017_s18, 64  ;;  %p3437_p13 = scmp.lt.u32.totalorder %s4017_s18, %s4592_s3 }
  0x6f   : > { %p3432_p4 = scmp.ne.s32.totalorder %s4017_s18, %s3431_s17  ;;  %p3438_p7 = scmp.lt.u32.totalorder %s3436_s10, %s3431_s17 }
  0x70   : > { %p3440_p3 = scmp.lt.u32.totalorder %s3431_s17, %s4017_s18 }
  0x71   : > { %p3434_p8 = pnand %p3432_p4, %p3988_p0  ;;  %p3439_p2 = por %p3438_p7, %p3437_p13 }
  0x73   : > { %p3435_p11 = pneg %p3434_p8  ;;  %p3441_p5 = por %p3440_p3, %p3439_p2 }
  0x75   : > { %p3442_p12 = pnand %p3441_p5, %p3435_p11 }
  0x77   : > { %3445 = shalt.err (!%p3442_p12)
}
  0x78   : > { %s3446_s27 = scalar_lea.vmem %s4023_s20, 64  ;;  %s3765_s12 = smov [#allocation8]  }
  0x79   : > { %p3447_p1 = scmp.ne.s32.totalorder %s4023_s20, %s3446_s27  ;;  %s3451_s11 = sshll.u32 %s3765_s12, 4  ;;  %s3452_s11 = int_to_ptr.vmem [resolvable:$false] %s3451_s11 }
  0x7a   : > { %s3453_s15 = scalar_lea.vmem %s3452_s11, 128  ;;  %p3454_p4 = scmp.lt.s32.totalorder %s4023_s20, %s3452_s11 }
  0x7b   : > { %p3449_p6 = pnand %p3447_p1, %p3988_p0  ;;  %p3455_p8 = scmp.lt.s32.totalorder %s3453_s15, %s3446_s27 }
  0x7d   : > { %p3450_p10 = pneg %p3449_p6  ;;  %p3456_p13 = por %p3455_p8, %p3454_p4 }
  0x7f   : > { %p3457_p7 = pnand %p3456_p13, %p3450_p10 }
  0x81   : > { %3460 = shalt.err (!%p3457_p7)
}
  0x82   : > { %3285 = dma.hbm_to_vmem [thread:$0]  (!%p3967_p9), %s4017_s18, 64, %s4023_s20, %s4560_s8  }
  0x83   : > { %s4593_s5 = sld [smem:[#allocation37_spill]]  ;;  %s553_s27 = scalar_lea.vmem [#allocation11], %s4021_s9 }
  0x84   : > { %s560_s12 = sshll.u32 %s553_s27, 4  ;;  %s561_s12 = int_to_ptr.vmem [resolvable:$true] %s560_s12 }
  0x89   : > { %s4056_s14 = scalar_lea.hbm %s4593_s5, %s4026_s1  ;;  %s3466_s20 = scalar_lea.hbm %s4593_s5, 64 }
  0x8a   : > { %s3461_s15 = scalar_lea.hbm %s4056_s14, 32  ;;  %p3467_p5 = scmp.lt.u32.totalorder %s4056_s14, %s4593_s5 }
  0x8b   : > { %p3462_p11 = scmp.ne.s32.totalorder %s4056_s14, %s3461_s15  ;;  %p3468_p12 = scmp.lt.u32.totalorder %s3466_s20, %s3461_s15 }
  0x8c   : > { %p3470_p6 = scmp.lt.u32.totalorder %s3461_s15, %s4056_s14 }
  0x8d   : > { %p3464_p2 = pnand %p3462_p11, %p3988_p0  ;;  %p3469_p1 = por %p3468_p12, %p3467_p5 }
  0x8f   : > { %p3465_p3 = pneg %p3464_p2  ;;  %p3471_p10 = por %p3470_p6, %p3469_p1 }
  0x91   : > { %p3472_p4 = pnand %p3471_p10, %p3465_p3 }
  0x93   : > { %3475 = shalt.err (!%p3472_p4)
}
  0x94   : > { %s3476_s27 = scalar_lea.vmem %s561_s12, 32  ;;  %s3766_s8 = smov [#allocation11]  }
  0x95   : > { %p3477_p8 = scmp.ne.s32.totalorder %s561_s12, %s3476_s27  ;;  %s3481_s11 = sshll.u32 %s3766_s8, 4  ;;  %s3482_s11 = int_to_ptr.vmem [resolvable:$false] %s3481_s11 }
  0x96   : > { %s3483_s3 = scalar_lea.vmem %s3482_s11, 64  ;;  %p3484_p11 = scmp.lt.s32.totalorder %s561_s12, %s3482_s11 }
  0x97   : > { %p3479_p13 = pnand %p3477_p8, %p3988_p0  ;;  %p3485_p2 = scmp.lt.s32.totalorder %s3483_s3, %s3476_s27 }
  0x99   : > { %p3480_p7 = pneg %p3479_p13  ;;  %p3486_p9 = por %p3485_p2, %p3484_p11 }
  0x9b   : > { %p3487_p5 = pnand %p3486_p9, %p3480_p7 }
  0x9d   : > { %3490 = shalt.err (!%p3487_p5)
}
  0x9e   : > { %p4594_p12 = scmp.ne.s32.totalorder %s4588_s23, 0  ;;  %s4595_s15 = scalar_lea.sflag [#allocation12], %s3972_s26 }
  0x9f   : > { %s3767_s18 = smov [#allocation17]   ;;  %s3491_s8 = scalar_lea.hbm %s4535_s13, 512 }
  0xa0   : > { %3291 = dma.hbm_to_vmem [thread:$0]  (!%p4594_p12), %s4056_s14, 32, %s561_s12, %s4595_s15  }
  0xa1   : > { %s445_s20 = sshll.u32 %s3767_s18, 4  ;;  %p3492_p3 = scmp.ne.s32.totalorder %s4535_s13, %s3491_s8  ;;  %s446_s20 = int_to_ptr.vmem [resolvable:$true] %s445_s20 }
  0xa2   : > { %p4596_p9 = scmp.ne.s32.totalorder %s4581_s24, 0  ;;  %p3498_p4 = scmp.lt.u32.totalorder %s3491_s8, %s4535_s13 }
  0xa4   : > { %p4597_p1 = pneg %p4596_p9 }
  0xa6   : > { %p3494_p6 = pnand %p3492_p3, %p4597_p1 }
  0xa8   : > { %p3495_p10 = pneg %p3494_p6 }
  0xaa   : > { %p3500_p8 = pnand %p3498_p4, %p3495_p10 }
  0xac   : > { %3503 = shalt.err (!%p3500_p8)
}
  0xad   : > { %s3504_s14 = scalar_lea.vmem %s446_s20, 512  ;;  %p4598_p7 = pmov %p4597_p1 }
  0xae   : > { %p3505_p13 = scmp.ne.s32.totalorder %s446_s20, %s3504_s14  ;;  %p3512_p5 = scmp.lt.s32.totalorder %s446_s20, %s446_s20 }
  0xaf   : > { %p3513_p12 = scmp.lt.s32.totalorder %s3504_s14, %s3504_s14 }
  0xb0   : > { %p3507_p11 = pnand %p3505_p13, %p4598_p7 }
  0xb1   : > { %p3514_p0 = por %p3513_p12, %p3512_p5 }
  0xb2   : > { %p3508_p2 = pneg %p3507_p11 }
  0xb4   : > { %p3515_p1 = pnand %p3514_p0, %p3508_p2 }
  0xb6   : > { %3518 = shalt.err (!%p3515_p1)
}
  0xb7   : > { %s4599_s5 = smov 16   ;;  %s4600_s12 = smov 256  }
  0xb8   : > { %3272 = dma.hbm_to_vmem [thread:$0]  (!%p4596_p9), %s4535_s13, 512, %s446_s20, [#allocation18], %s4600_s12, %s4600_s12, %s4599_s5  }
  0xb9   : > { %s4106_s8 = scalar_lea.hbm %s4522_s0, %s3962_s25  ;;  %s463_s24 = scalar_lea.vmem [#allocation2], %s3965_s29 }
  0xba   : > { %s470_s11 = sshll.u32 %s463_s24, 4  ;;  %s460_s27 = scalar_lea.sflag [#allocation3], %s3959_s28  ;;  %s471_s11 = int_to_ptr.vmem [resolvable:$true] %s470_s11 }
  0xbb   : > { %s3519_s3 = scalar_lea.hbm %s4106_s8, 64  ;;  %p4601_p12 = scmp.ne.s32.totalorder %s4590_s22, 0 }
  0xbc   : > { %p3520_p0 = scmp.ne.s32.totalorder %s4106_s8, %s3519_s3  ;;  %s3524_s5 = scalar_lea.hbm %s4522_s0, 128 }
  0xbd   : > { %p3525_p9 = scmp.lt.u32.totalorder %s4106_s8, %s4522_s0  ;;  %p3526_p10 = scmp.lt.u32.totalorder %s3524_s5, %s3519_s3 }
  0xbe   : > { %p3522_p3 = pnand %p3520_p0, %p4601_p12  ;;  %p3528_p8 = scmp.lt.u32.totalorder %s3519_s3, %s4106_s8 }
  0xbf   : > { %p3527_p4 = por %p3526_p10, %p3525_p9 }
  0xc0   : > { %p3523_p6 = pneg %p3522_p3 }
  0xc1   : > { %p3529_p13 = por %p3528_p8, %p3527_p4 }
  0xc3   : > { %p3530_p7 = pnand %p3529_p13, %p3523_p6 }
  0xc5   : > { %3533 = shalt.err (!%p3530_p7)
}
  0xc6   : > { %s3534_s28 = scalar_lea.vmem %s471_s11, 64  ;;  %s3768_s18 = smov [#allocation2]  }
  0xc7   : > { %p3535_p11 = scmp.ne.s32.totalorder %s471_s11, %s3534_s28  ;;  %s3539_s17 = sshll.u32 %s3768_s18, 4  ;;  %s3540_s17 = int_to_ptr.vmem [resolvable:$false] %s3539_s17 }
  0xc8   : > { %s3541_s10 = scalar_lea.vmem %s3540_s17, 128  ;;  %p3542_p1 = scmp.lt.s32.totalorder %s471_s11, %s3540_s17 }
  0xc9   : > { %p3537_p2 = pnand %p3535_p11, %p4601_p12  ;;  %p3543_p0 = scmp.lt.s32.totalorder %s3541_s10, %s3534_s28 }
  0xcb   : > { %p3538_p5 = pneg %p3537_p2  ;;  %p3544_p3 = por %p3543_p0, %p3542_p1 }
  0xcd   : > { %p3545_p9 = pnand %p3544_p3, %p3538_p5 }
  0xcf   : > { %3548 = shalt.err (!%p3545_p9)
}
  0xd0   : > { %p4602_p10 = scmp.ne.s32.totalorder %s4588_s23, 0  ;;  %s4131_s14 = scalar_lea.hbm %s4524_s2, %s3962_s25 }
  0xd1   : > { %s499_s20 = scalar_lea.vmem [#allocation7], %s3965_s29  ;;  %s3549_s12 = scalar_lea.hbm %s4131_s14, 64 }
  0xd2   : > { %3276 = dma.hbm_to_vmem [thread:$0]  (!%p4602_p10), %s4106_s8, 64, %s471_s11, %s460_s27  }
  0xd3   : > { %s506_s5 = sshll.u32 %s499_s20, 4  ;;  %p3550_p6 = scmp.ne.s32.totalorder %s4131_s14, %s3549_s12  ;;  %s507_s5 = int_to_ptr.vmem [resolvable:$true] %s506_s5 }
  0xd4   : > { %s3554_s8 = scalar_lea.hbm %s4524_s2, 128  ;;  %p3555_p13 = scmp.lt.u32.totalorder %s4131_s14, %s4524_s2 }
  0xd5   : > { %p3552_p4 = pnand %p3550_p6, %p4601_p12  ;;  %p3556_p7 = scmp.lt.u32.totalorder %s3554_s8, %s3549_s12 }
  0xd6   : > { %p3558_p2 = scmp.lt.u32.totalorder %s3549_s12, %s4131_s14 }
  0xd7   : > { %p3553_p8 = pneg %p3552_p4  ;;  %p3557_p11 = por %p3556_p7, %p3555_p13 }
  0xd9   : > { %p3559_p5 = por %p3558_p2, %p3557_p11 }
  0xdb   : > { %p3560_p1 = pnand %p3559_p5, %p3553_p8 }
  0xdd   : > { %3563 = shalt.err (!%p3560_p1)
}
  0xde   : > { %s3564_s25 = scalar_lea.vmem %s507_s5, 64  ;;  %s3769_s29 = smov [#allocation7]  }
  0xdf   : > { %p3565_p0 = scmp.ne.s32.totalorder %s507_s5, %s3564_s25  ;;  %s3569_s18 = sshll.u32 %s3769_s29, 4  ;;  %s3570_s18 = int_to_ptr.vmem [resolvable:$false] %s3569_s18 }
  0xe0   : > { %s3571_s17 = scalar_lea.vmem %s3570_s18, 128  ;;  %p3572_p6 = scmp.lt.s32.totalorder %s507_s5, %s3570_s18 }
  0xe1   : > { %p3567_p3 = pnand %p3565_p0, %p4601_p12  ;;  %p3573_p4 = scmp.lt.s32.totalorder %s3571_s17, %s3564_s25 }
  0xe3   : > { %p3568_p9 = pneg %p3567_p3  ;;  %p3574_p10 = por %p3573_p4, %p3572_p6 }
  0xe5   : > { %p3575_p7 = pnand %p3574_p10, %p3568_p9 }
  0xe7   : > { %3578 = shalt.err (!%p3575_p7)
}
  0xe8   : > { %p4603_p13 = scmp.ne.s32.totalorder %s4588_s23, 0  ;;  %s4604_s10 = scalar_lea.sflag [#allocation6], %s3972_s26 }
  0xe9   : > { %s4157_s20 = scalar_lea.hbm %s4526_s4, %s4026_s1  ;;  %s535_s12 = scalar_lea.vmem [#allocation10], %s4021_s9 }
  0xea   : > { %3282 = dma.hbm_to_vmem [thread:$0]  (!%p4603_p13), %s4131_s14, 64, %s507_s5, %s4604_s10  }
  0xeb   : > { %s542_s15 = sshll.u32 %s535_s12, 4  ;;  %s3579_s28 = scalar_lea.hbm %s4157_s20, 32  ;;  %s543_s15 = int_to_ptr.vmem [resolvable:$true] %s542_s15 }
  0xec   : > { %p3580_p10 = scmp.ne.s32.totalorder %s4157_s20, %s3579_s28  ;;  %s3584_s14 = scalar_lea.hbm %s4526_s4, 64 }
  0xed   : > { %p3585_p2 = scmp.lt.u32.totalorder %s4157_s20, %s4526_s4  ;;  %p3586_p5 = scmp.lt.u32.totalorder %s3584_s14, %s3579_s28 }
  0xee   : > { %p3582_p8 = pnand %p3580_p10, %p4601_p12  ;;  %p3588_p0 = scmp.lt.u32.totalorder %s3579_s28, %s4157_s20 }
  0xef   : > { %p3587_p1 = por %p3586_p5, %p3585_p2 }
  0xf0   : > { %p3583_p11 = pneg %p3582_p8 }
  0xf1   : > { %p3589_p3 = por %p3588_p0, %p3587_p1 }
  0xf3   : > { %p3590_p9 = pnand %p3589_p3, %p3583_p11 }
  0xf5   : > { %3593 = shalt.err (!%p3590_p9)
}
  0xf6   : > { %s3594_s25 = scalar_lea.vmem %s543_s15, 32  ;;  %s3770_s29 = smov [#allocation10]  }
  0xf7   : > { %p3595_p6 = scmp.ne.s32.totalorder %s543_s15, %s3594_s25  ;;  %s3599_s18 = sshll.u32 %s3770_s29, 4  ;;  %s3600_s18 = int_to_ptr.vmem [resolvable:$false] %s3599_s18 }
  0xf8   : > { %s3601_s17 = scalar_lea.vmem %s3600_s18, 64  ;;  %p3602_p10 = scmp.lt.s32.totalorder %s543_s15, %s3600_s18 }
  0xf9   : > { %p3597_p4 = pnand %p3595_p6, %p4601_p12  ;;  %p3603_p8 = scmp.lt.s32.totalorder %s3601_s17, %s3594_s25 }
  0xfb   : > { %p3598_p7 = pneg %p3597_p4  ;;  %p3604_p13 = por %p3603_p8, %p3602_p10 }
  0xfd   : > { %p3605_p2 = pnand %p3604_p13, %p3598_p7 }
  0xff   : > { %3608 = shalt.err (!%p3605_p2)
}
 0x100   : > { %p4605_p5 = scmp.ne.s32.totalorder %s4588_s23, 0  ;;  %s4606_s10 = scalar_lea.sflag [#allocation9], %s3972_s26 }
 0x101   : > { %s4183_s12 = scalar_lea.hbm %s4528_s6, %s4026_s1  ;;  %s571_s28 = scalar_lea.vmem [#allocation13], %s4021_s9 }
 0x102   : > { %3288 = dma.hbm_to_vmem [thread:$0]  (!%p4605_p5), %s4157_s20, 32, %s543_s15, %s4606_s10  }
 0x103   : > { %s578_s8 = sshll.u32 %s571_s28, 4  ;;  %s3609_s11 = scalar_lea.hbm %s4183_s12, 32  ;;  %s579_s8 = int_to_ptr.vmem [resolvable:$true] %s578_s8 }
 0x104   : > { %p3610_p13 = scmp.ne.s32.totalorder %s4183_s12, %s3609_s11  ;;  %s3614_s20 = scalar_lea.hbm %s4528_s6, 64 }
 0x105   : > { %p3615_p0 = scmp.lt.u32.totalorder %s4183_s12, %s4528_s6  ;;  %p3616_p3 = scmp.lt.u32.totalorder %s3614_s20, %s3609_s11 }
 0x106   : > { %p3612_p11 = pnand %p3610_p13, %p4601_p12  ;;  %p3618_p6 = scmp.lt.u32.totalorder %s3609_s11, %s4183_s12 }
 0x107   : > { %p3617_p9 = por %p3616_p3, %p3615_p0 }
 0x108   : > { %p3613_p1 = pneg %p3612_p11 }
 0x109   : > { %p3619_p4 = por %p3618_p6, %p3617_p9 }
 0x10b   : > { %p3620_p7 = pnand %p3619_p4, %p3613_p1 }
 0x10d   : > { %3623 = shalt.err (!%p3620_p7)
}
 0x10e   : > { %s3624_s25 = scalar_lea.vmem %s579_s8, 32  ;;  %s3771_s29 = smov [#allocation13]  }
 0x10f   : > { %p3625_p10 = scmp.ne.s32.totalorder %s579_s8, %s3624_s25  ;;  %s3629_s18 = sshll.u32 %s3771_s29, 4  ;;  %s3630_s18 = int_to_ptr.vmem [resolvable:$false] %s3629_s18 }
 0x110   : > { %s3631_s17 = scalar_lea.vmem %s3630_s18, 64  ;;  %p3632_p13 = scmp.lt.s32.totalorder %s579_s8, %s3630_s18 }
 0x111   : > { %p3627_p8 = pnand %p3625_p10, %p4601_p12  ;;  %p3633_p11 = scmp.lt.s32.totalorder %s3631_s17, %s3624_s25 }
 0x113   : > { %p3628_p2 = pneg %p3627_p8  ;;  %p3634_p5 = por %p3633_p11, %p3632_p13 }
 0x115   : > { %p3635_p0 = pnand %p3634_p5, %p3628_p2 }
 0x117   : > { %3638 = shalt.err (!%p3635_p0)
}
 0x118   : > { %p4607_p3 = scmp.ne.s32.totalorder %s4588_s23, 0  ;;  %s4608_s10 = scalar_lea.sflag [#allocation12], %s3972_s26 }
 0x119   : > { %s4209_s28 = scalar_lea.hbm %s4529_s7, %s4026_s1  ;;  %s589_s11 = scalar_lea.vmem [#allocation14], %s4021_s9 }
 0x11a   : > { %3294 = dma.hbm_to_vmem [thread:$0]  (!%p4607_p3), %s4183_s12, 32, %s579_s8, %s4608_s10  }
 0x11b   : > { %s596_s14 = sshll.u32 %s589_s11, 4  ;;  %s586_s5 = scalar_lea.sflag [#allocation15], %s3972_s26  ;;  %s597_s14 = int_to_ptr.vmem [resolvable:$true] %s596_s14 }
 0x11c   : > { %s3639_s20 = scalar_lea.hbm %s4209_s28, 32  ;;  %s3644_s8 = scalar_lea.hbm %s4529_s7, 64 }
 0x11d   : > { %p3640_p5 = scmp.ne.s32.totalorder %s4209_s28, %s3639_s20  ;;  %p3645_p6 = scmp.lt.u32.totalorder %s4209_s28, %s4529_s7 }
 0x11e   : > { %p3646_p4 = scmp.lt.u32.totalorder %s3644_s8, %s3639_s20  ;;  %p3648_p10 = scmp.lt.u32.totalorder %s3639_s20, %s4209_s28 }
 0x11f   : > { %p3642_p1 = pnand %p3640_p5, %p4601_p12 }
 0x120   : > { %p3647_p7 = por %p3646_p4, %p3645_p6 }
 0x121   : > { %p3643_p9 = pneg %p3642_p1 }
 0x122   : > { %p3649_p8 = por %p3648_p10, %p3647_p7 }
 0x124   : > { %p3650_p2 = pnand %p3649_p8, %p3643_p9 }
 0x126   : > { %3653 = shalt.err (!%p3650_p2)
}
 0x127   : > { %s3654_s26 = scalar_lea.vmem %s597_s14, 32  ;;  %s3772_s9 = smov [#allocation14]  }
 0x128   : > { %p3655_p13 = scmp.ne.s32.totalorder %s597_s14, %s3654_s26  ;;  %s3659_s25 = sshll.u32 %s3772_s9, 4  ;;  %s3660_s25 = int_to_ptr.vmem [resolvable:$false] %s3659_s25 }
 0x129   : > { %s3661_s29 = scalar_lea.vmem %s3660_s25, 64  ;;  %p3662_p5 = scmp.lt.s32.totalorder %s597_s14, %s3660_s25 }
 0x12a   : > { %p3657_p11 = pnand %p3655_p13, %p4601_p12  ;;  %p3663_p1 = scmp.lt.s32.totalorder %s3661_s29, %s3654_s26 }
 0x12c   : > { %p3658_p0 = pneg %p3657_p11  ;;  %p3664_p3 = por %p3663_p1, %p3662_p5 }
 0x12e   : > { %p3665_p4 = pnand %p3664_p3, %p3658_p0 }
 0x130   : > { %3668 = shalt.err (!%p3665_p4)
}
 0x131   : > { %p4609_p6 = scmp.ne.s32.totalorder %s4588_s23, 0  ;;  %p4610_p9 = scmp.ne.s32.totalorder %s4580_s21, 0 }
 0x132   : > { %s4233_s22 = sand.u32 (!%p4610_p9), 1, %s3751_s30   ;;  %p4611_p12 = scmp.ne.s32.totalorder (!%p4610_p9), %s4577_s19, 0 }
 0x133   : > { %3297 = dma.hbm_to_vmem [thread:$0]  (!%p4609_p6), %s4209_s28, 32, %s597_s14, %s586_s5  }
 0x134   : > { %605 = sbr.rel (%p4610_p9) target bundleno = 2270 (0x8de), region = 76  ;;  %s4236_s18 = sshll.u32 (!%p4610_p9), %s4233_s22, 2 }
 0x135   : > { %s608_s17 = scalar_lea.sflag (!%p4610_p9), [#allocation3], %s4233_s22  ;;  %s611_s10 = scalar_lea.vmem (!%p4610_p9), [#allocation2], %s4236_s18 }
 0x13b   : > { %3714 = dma.done.wait (%p4611_p12), %s608_s17, 64  }
 0x13c   : > { %3716 = vsyncadd (%p4611_p12), %s608_s17, 4294967232  ;;  %s4612_s23 = sld [smem:[#allocation30_spill]]  ;;  %s620_s3 = scalar_lea.vmem [#allocation5], %s4236_s18 }
 0x142   : > { %s616_s21 = sand.u32 1, %s4612_s23  }
 0x143   : > { %s617_s24 = scalar_lea.sflag [#allocation6], %s616_s21 }
 0x144   : > { %3718 = dma.done.wait (%p4611_p12), %s617_s24, 128  }
 0x145   : > { %3720 = vsyncadd (%p4611_p12), %s617_s24, 4294967168  ;;  %s629_s28 = scalar_lea.vmem [#allocation7], %s4236_s18  ;;  %s635_s11 = scalar_lea.sflag [#allocation9], %s616_s21 }
 0x146   : > { %s638_s14 = scalar_lea.vmem [#allocation8], %s4236_s18 }
 0x147   : > { %3722 = dma.done.wait (%p4611_p12), %s635_s11, 96  }
 0x148   : > { %3724 = vsyncadd (%p4611_p12), %s635_s11, 4294967200  ;;  %s2973_s5 = sshll.u32 %s4233_s22, 1  ;;  %s653_s15 = scalar_lea.sflag [#allocation12], %s616_s21 }
 0x149   : > { %s647_s20 = scalar_lea.vmem [#allocation10], %s2973_s5  ;;  %s656_s12 = scalar_lea.vmem [#allocation11], %s2973_s5 }
 0x14a   : > { %3726 = dma.done.wait (%p4611_p12), %s653_s15, 64  }
 0x14b   : > { %3728 = vsyncadd (%p4611_p12), %s653_s15, 4294967232  ;;  %s665_s8 = scalar_lea.vmem [#allocation13], %s2973_s5  ;;  %s671_s27 = scalar_lea.sflag [#allocation15], %s616_s21 }
 0x14c   : > { %s674_s1 = scalar_lea.vmem [#allocation14], %s2973_s5 }
 0x14d   : > { %3730 = dma.done.wait (%p4611_p12), %s671_s27, 32  }
 0x14e   : > { %3732 = vsyncadd (%p4611_p12), %s671_s27, 4294967264  ;;  %p4613_p3 = scmp.eq.s32.totalorder %s4612_s23, 0 }
 0x150   : > { %3734 = dma.done.wait (%p4613_p3), [#allocation15], 512   ;;  %p4614_p7 = pmov %p4613_p3 }
 0x151   : > { %p4615_p10 = pmov %p4613_p3 }
 0x152   : > { %3736 = vsyncadd (%p4614_p7), [#allocation15], 4294966784 }
 0x153   : > { %3738 = dma.done.wait (%p4615_p10), [#allocation18], 512   ;;  %p4616_p8 = pmov %p4613_p3 }
 0x154   : > { %v4273_v0 = vld [vmem:[%s647_s20] sm:$0x3]  ;;  %v4275_v1 = vld [vmem:[%s656_s12] sm:$0x3]  ;;  %v4277_v2 = vld [vmem:[%s665_s8] sm:$0x3] }
 0x155   : > { %3740 = vsyncadd (%p4616_p8), [#allocation18], 4294966784  ;;  %v767_v3 = vunpack.c.l.bf16 %v4273_v0  ;;  %v769_v4 = vunpack.c.l.bf16 %v4275_v1  ;;  %v4281_v5 = vld [vmem:[%s674_s1] sm:$0x3]  ;;  %v771_v6 = vunpack.c.l.bf16 %v4277_v2  ;;  %v762_v10 = vld [vmem:[%s611_s10] sm:$0xf] }
 0x156   : > { %v773_v7 = vunpack.c.l.bf16 %v4281_v5  ;;  %vm833_vm0 = vcmask 1043456   ;;  %v763_v11 = vld [vmem:[%s620_s3] sm:$0xf]  ;;  %s4617_s9 = sld [smem:[#allocation38_spill]]  ;;  %vm826_vm1 = vcmask 31744   ;;  %s4618_s5 = sld [smem:[#allocation39_spill]] }
 0x157   : > { %v3349_v8 = vpack.i.bf16 %v769_v4, %v767_v3  ;;  %3096 = vmatprep.subr.msk.mxu1 %vm833_vm0, %v762_v10  ;;  %3106 = vmatprep.subr.msk.mxu0 %vm833_vm0, %v763_v11  ;;  %vm1262_vm2 = vcmask 261120   ;;  %v765_v55 = vld [vmem:[%s638_s14] sm:$0xf]  ;;  %vm1601_vm4 = vcmask 130048   ;;  %v3773_v56 = vmov 0.0   ;;  %s4623_s14 = sld [smem:[#allocation40_spill]]  ;;  %vm3228_vm9 = vmpackc.low %vm826_vm1, %vm826_vm1 }
 0x158   : > { %v3361_v9 = vpack.i.bf16 %v773_v7, %v771_v6  ;;  %3097 = vmatpush3.msk.msra.mxu1 %vm833_vm0, %v762_v10  ;;  %3107 = vmatpush3.msk.msra.mxu0 %vm833_vm0, %v763_v11  ;;  %vm4339_vm3 = vmpackc.low %vm1262_vm2, %vm1262_vm2  ;;  %vm3774_vm5 = vmmov 0   ;;  %v764_v57 = vld [vmem:[%s629_s28] sm:$0xf]  ;;  %v791_v62 = vld [vmem:[#allocation17 + $0x8] sm:$0xff]  ;;  %vm3775_vm6 = vmmov 1   ;;  %vm1678_vm8 = vcmask 97280  }
 0x159   : > { %3350 = vxpose.xlu0.b32.start.end [1/1] (short) (narrow) %v3349_v8, 16  ;;  %3101 = vmatprep.subr.msk.mxu1 %vm833_vm0, %v762_v10  ;;  %v793_v63 = vld [vmem:[#allocation17 + $0x18] sm:$0xf]  ;;  %vm4372_vm7 = vmpackc.low %vm833_vm0, %vm3775_vm6  ;;  %s4624_s17 = sld [smem:[#allocation41_spill]]  ;;  %s2979_s24 = sshll.u32 %s4233_s22, 4 }
 0x15a   : > { %v4369_v8 = vpack.c.bf16 %v793_v63, %v791_v62  ;;  %vm3234_vm10 = vmpackc.low %vm1601_vm4, %vm1601_vm4  ;;  %s761_s3 = scalar_lea.vmem [#allocation19], %s2979_s24  ;;  %s4625_s20 = sld [smem:[#allocation34_spill]] }
 0x15b   : > { %s2703_s11 = sshll.u32 %s761_s3, 4  ;;  %s3054_s15 = sshll.u32 %s4612_s23, 8  ;;  %s4472_s11 = int_to_ptr.vmem [resolvable:$true] %s2703_s11 }
 0x15c   : > { %v774_v12 = vld [vmem:[%s4617_s9] sm:$0xff]  ;;  %v775_v13 = vld [vmem:[%s4617_s9 + $0x8] sm:$0xff]  ;;  %v776_v27 = vld [vmem:[%s4617_s9 + $0x10] sm:$0xff]  ;;  %s4626_s27 = sld [smem:[#allocation43_spill]]  ;;  %s2690_s18 = scalar_lea.sflag [#allocation4], %s4233_s22 }
 0x15d   : > { %v3169_v14 = vpack.c.bf16 %v775_v13, %v774_v12  ;;  %v777_v28 = vld [vmem:[%s4617_s9 + $0x18] sm:$0xff]  ;;  %v778_v30 = vld [vmem:[%s4618_s5] sm:$0xff]  ;;  %v779_v31 = vld [vmem:[%s4618_s5 + $0x8] sm:$0xff]  ;;  %s3669_s23 = scalar_lea.vmem %s4472_s11, 256  ;;  %s3776_s28 = smov [#allocation19]  }
 0x15e   : > { %3362 = vxpose.xlu0.b32.start.end [1/1] (short) (narrow) %v3361_v9, 16  ;;  %v3173_v29 = vpack.c.bf16 %v777_v28, %v776_v27  ;;  %v3177_v32 = vpack.c.bf16 %v779_v31, %v778_v30  ;;  %v780_v33 = vld [vmem:[%s4618_s5 + $0x10] sm:$0xff]  ;;  %v781_v34 = vld [vmem:[%s4618_s5 + $0x18] sm:$0xff]  ;;  %v782_v2 = vld [vmem:[%s4623_s14] sm:$0xff]  ;;  %p3670_p2 = scmp.ne.s32.totalorder %s4472_s11, %s3669_s23  ;;  %s3673_s19 = sshll.u32 %s3776_s28, 4  ;;  %s3674_s19 = int_to_ptr.vmem [resolvable:$false] %s3673_s19 }
 0x15f   : > { %3170 = vmatprep.subr.bf16.mxu0 %v3169_v14  ;;  %v3181_v35 = vpack.c.bf16 %v781_v34, %v780_v33  ;;  %v790_v9 = vld [vmem:[#allocation17] sm:$0xff]  ;;  %s3675_s26 = scalar_lea.vmem %s3674_s19, 512  ;;  %p3676_p5 = scmp.lt.s32.totalorder %s4472_s11, %s3674_s19 }
 0x160   : > { %p4627_p13 = scmp.ne.s32.totalorder %s4625_s20, 0  ;;  %p3677_p1 = scmp.lt.s32.totalorder %s3675_s26, %s3669_s23 }
 0x162   : > { %s4477_s1 = scalar_lea.hbm %s4626_s27, %s3054_s15  ;;  %p3671_p11 = pnand %p3670_p2, %p4627_p13 }
 0x163   : > { %p3678_p4 = por %p3677_p1, %p3676_p5 }
 0x164   : > { %p3672_p0 = pneg %p3671_p11 }
 0x166   : > { %p3679_p6 = pnand %p3678_p4, %p3672_p0 }
 0x1d9   : > { %v3351_v15 = vpop.trf.xlu0 }
 0x1da   : > { %v3352_v16 = vunpack.i.l.bf16 %v3351_v15  ;;  %v3355_v19 = vunpack.i.h.bf16 %v3351_v15 }
 0x1dc   : > { %3098 = vmatprep.mubr.msk.f32.mxu1 %vm826_vm1, %v3352_v16 }
 0x1dd   : > { %v3356_v17 = vpop.trf.xlu0 }
 0x1de   : > { %v3357_v18 = vunpack.i.l.bf16 %v3356_v17  ;;  %v3360_v20 = vunpack.i.h.bf16 %v3356_v17 }
 0x1e0   : > { %3099 = vmatmul.mubr.msk.f32.vlgmr.msra.gmra.mrb[0].mxu1 %vm826_vm1, %v3357_v18 }
 0x1e1   : > { %v3363_v21 = vpop.trf.xlu0  ;;  %3103 = vmatprep.mubr.msk.f32.mxu1 %vm826_vm1, %v3355_v19  ;;  %3102 = vmatpush3.msk.msra.mxu1 %vm833_vm0, %v762_v10  ;;  %v792_v10 = vld [vmem:[#allocation17 + $0x10] sm:$0xf] }
 0x1e2   : > { %v3367_v22 = vunpack.i.h.bf16 %v3363_v21  ;;  %v3364_v23 = vunpack.i.l.bf16 %v3363_v21  ;;  %3111 = vmatprep.subr.msk.mxu1 %vm833_vm0, %v763_v11  ;;  %v3200_v12 = vpack.c.bf16 %v792_v10, %v790_v9  ;;  %v786_v21 = vld [vmem:[#allocation16] sm:$0xff] }
 0x1e4   : > { %3104 = vmatmul.mubr.msk.f32.vlgmr.msra.gmra.mrb[2].mxu1 %vm826_vm1, %v3360_v20  ;;  %3108 = vmatprep.mubr.msk.f32.mxu0 %vm826_vm1, %v3364_v23  ;;  %v787_v23 = vld [vmem:[#allocation16 + $0x8] sm:$0xff] }
 0x1e5   : > { %v3368_v24 = vpop.trf.xlu0  ;;  %3113 = vmatprep.mubr.msk.f32.mxu1 %vm826_vm1, %v3367_v22  ;;  %3112 = vmatpush3.msk.msra.mxu1 %vm833_vm0, %v763_v11  ;;  %v788_v22 = vld [vmem:[#allocation16 + $0x10] sm:$0xf] }
 0x1e6   : > { %v3372_v25 = vunpack.i.h.bf16 %v3368_v24  ;;  %v3369_v26 = vunpack.i.l.bf16 %v3368_v24  ;;  %3178 = vmatprep.subr.bf16.mxu1 %v3177_v32  ;;  %v789_v24 = vld [vmem:[#allocation16 + $0x18] sm:$0xf] }
 0x1e7   : > { %v3215_v33 = vpack.c.bf16 %v789_v24, %v787_v23 }
 0x1e8   : > { %3109 = vmatmul.mubr.msk.f32.vlgmr.msra.gmra.mrb[0].mxu0 %vm826_vm1, %v3369_v26  ;;  %3114 = vmatmul.mubr.msk.f32.vlgmr.msra.gmra.mrb[4].mxu1 %vm826_vm1, %v3372_v25 }
 0x1e9   : > { %3172 = vmatpush3.bf16.msra.mxu0 %v3169_v14  ;;  %3180 = vmatpush3.bf16.msra.mxu1 %v3177_v32 }
 0x1ea   : > { %3174 = vmatprep.subr.bf16.mxu0 %v3173_v29  ;;  %3182 = vmatprep.subr.bf16.mxu1 %v3181_v35 }
 0x1ed   : > { %3176 = vmatpush3.bf16.msra.mxu0 %v3173_v29  ;;  %3184 = vmatpush3.bf16.msra.mxu1 %v3181_v35  ;;  %v3218_v35 = vpack.c.bf16 %v788_v22, %v786_v21 }
 0x1ee   : > { %3152 = vmatprep.subr.mxu1 %v3773_v56 }
 0x2b3   : > { %v3100_v36 = vpop.f32.mrb[0].mxu1 }
 0x2b4   : > { %v903_v37 = vpop.f32.mrb[1].mxu1 }
 0x2b7   : > { %v3105_v38 = vpop.f32.mrb[2].mxu1 }
 0x2b8   : > { %v1255_v39 = vadd.f32 %v3105_v38, %v3100_v36  ;;  %v1257_v40 = vsub.f32 %v3100_v36, %v3105_v38  ;;  %v1016_v41 = vpop.f32.mrb[3].mxu1  ;;  %v785_v38 = vld [vmem:[%s4624_s17 + $0x8] sm:$0xff] }
 0x2b9   : > { %v1254_v42 = vadd.f32 %v1016_v41, %v903_v37  ;;  %v1256_v43 = vsub.f32 %v903_v37, %v1016_v41  ;;  %v784_v37 = vld [vmem:[%s4624_s17] sm:$0xff] }
 0x2bb   : > { %v3185_v45 = vpack.c.bf16 %v1257_v40, %v1256_v43  ;;  %v3191_v46 = vpack.c.bf16 %v1255_v39, %v1254_v42  ;;  %v3110_v47 = vpop.f32.mrb[0].mxu0  ;;  %v3115_v48 = vpop.f32.mrb[4].mxu1 }
 0x2bc   : > { %v1259_v49 = vadd.f32 %v3115_v48, %v3110_v47  ;;  %v1261_v50 = vsub.f32 %v3110_v47, %v3115_v48  ;;  %v1132_v51 = vpop.f32.mrb[1].mxu0  ;;  %v1245_v52 = vpop.f32.mrb[5].mxu1 }
 0x2bd   : > { %v1258_v53 = vadd.f32 %v1245_v52, %v1132_v51  ;;  %v1260_v54 = vsub.f32 %v1132_v51, %v1245_v52  ;;  %3187 = vmatprep.subr.msk.bf16.mxu0 %vm4339_vm3, %v3185_v45 }
 0x2bf   : > { %3124 = vmatprep.mubr.msk.f32.mxu0 %vm1262_vm2, %v1258_v53  ;;  %3135 = vmatprep.mubr.msk.f32.mxu1 %vm1262_vm2, %v1260_v54 }
 0x2c0   : > { %3125 = vmatmul.mubr.msk.f32.vlgmr.msra.gmra.mrb[2].mxu0 %vm1262_vm2, %v1259_v49  ;;  %3136 = vmatmul.mubr.msk.f32.vlgmr.msra.gmra.mrb[6].mxu1 %vm1262_vm2, %v1261_v50 }
 0x2c1   : > { %3190 = vmatpush3.bf16.xpose.msk.msra.mxu0 %vm4339_vm3, %v3185_v45  ;;  %3154 = vmatprep.mubr.msk.f32.mxu1 %vm3774_vm5, %v3773_v56 }
 0x2c2   : > { %3193 = vmatprep.subr.msk.bf16.mxu0 %vm4339_vm3, %v3191_v46  ;;  %3153 = vmatpush3.xpose.msk.msra.mxu1 %vm1601_vm4, %v765_v55 }
 0x2c3   : > { %3199 = vmatprep.subr.msk.bf16.mxu1 %vm4372_vm7, %v4369_v8 }
 0x2c5   : > { %3155 = vmatmul.mubr.msk.f32.vlgmr.msra.gmra.mrb[8].mxu1 %vm1601_vm4, %v764_v57 }
 0x2c6   : > { %1755 = vmatprep.mubr.f32.mxu1 %v3773_v56  ;;  %3202 = vmatpush1.bf16.msk.msra.mxu1 %vm4372_vm7, %v3200_v12 }
 0x393   : > { %v3126_v58 = vpop.f32.mrb[2].mxu0  ;;  %v3137_v59 = vpop.f32.mrb[6].mxu1 }
 0x394   : > { %v1335_v60 = vpop.f32.mrb[3].mxu0  ;;  %v1416_v61 = vpop.f32.mrb[7].mxu1 }
 0x395   : > { %3142 = vmatprep.mubr.msk.f32.mxu0 %vm1262_vm2, %v1416_v61 }
 0x396   : > { %3143 = vmatmul.mubr.msk.f32.vlgmr.msra.gmra.mrb[4].mxu0 %vm1262_vm2, %v3137_v59 }
 0x397   : > { %3196 = vmatpush3.bf16.xpose.msk.msra.mxu0 %vm4339_vm3, %v3191_v46  ;;  %3149 = vmatprep.mubr.msk.f32.mxu0 %vm1262_vm2, %v1335_v60 }
 0x398   : > { %v4381_v13 = vpop.f32.mrb[8].mxu1 }
 0x399   : > { %v3156_v14 = vpop.f32.mrb[9].mxu1 }
 0x39e   : > { %3150 = vmatmul.mubr.msk.f32.vlgmr.msra.gmra.mrb[4].mxu0 %vm1262_vm2, %v3126_v58 }
 0x39f   : > { %1928 = vmatprep.mubr.f32.mxu0 %v3773_v56 }
 0x471   : > { %v3151_v15 = vpop.f32.mrb[4].mxu0 }
 0x472   : > { %v1590_v16 = vpop.f32.mrb[5].mxu0  ;;  %v1600_v18 = vmul.f32 0.5, %v3151_v15 }
 0x473   : > { %v1599_v17 = vmul.f32 0.5, %v1590_v16 }
 0x475   : > { %3008 = vmatmul.mubr.msk.f32.vlgmr.msra.gmra.mrb[10].mxu1 %vm1678_vm8, %v1599_v17 }
 0x476   : > { %1761 = vmatprep.mubr.f32.mxu1 %v3773_v56 }
 0x479   : > { %3009 = vmatmul.mubr.msk.f32.gmra.mrb[12].mxu1 %vm1678_vm8, %v1600_v18 }
 0x47a   : > { %1845 = vmatprep.mubr.f32.mxu1 %v3773_v56 }
 0x548   : > { %v1757_v19 = vpop.f32.mrb[10].mxu1 }
 0x549   : > { %v1759_v20 = vpop.f32.mrb[11].mxu1  ;;  %v1768_v26 = vmul.f32 %v1757_v19, %v786_v21 }
 0x54a   : > { %v1769_v29 = vmul.f32 %v1759_v20, %v787_v23 }
 0x54c   : > { %v1763_v25 = vpop.f32.mrb[12].mxu1 }
 0x54d   : > { %v1770_v27 = vmul.f32 %v1763_v25, %v788_v22  ;;  %v1765_v28 = vpop.f32.mrb[13].mxu1 }
 0x54e   : > { %v1771_v30 = vmul.f32 %v1765_v28, %v789_v24 }
 0x54f   : > { %v3206_v31 = vpack.c.bf16 %v1770_v27, %v1768_v26 }
 0x550   : > { %v3203_v32 = vpack.c.bf16 %v1771_v30, %v1769_v29 }
 0x552   : > { %3205 = vmatprep.subr.msk.bf16.mxu1 %vm4372_vm7, %v3203_v32 }
 0x553   : > { %3208 = vmatpush1.bf16.msk.msra.mxu1 %vm4372_vm7, %v3206_v31 }
 0x554   : > { %3211 = vmatprep.subr.msk.bf16.mxu1 %vm4372_vm7, %v4369_v8 }
 0x556   : > { %3012 = vmatmul.mubr.msk.f32.vlgmr.msra.gmra.mrb[14].mxu1 %vm1678_vm8, %v771_v6 }
 0x557   : > { %3214 = vmatpush1.bf16.msk.msra.mxu1 %vm4372_vm7, %v3200_v12  ;;  %2008 = vmatprep.mubr.f32.mxu1 %v3773_v56 }
 0x55a   : > { %3019 = vmatmul.mubr.msk.f32.vlgmr.msra.gmra.mrb[16].mxu1 %vm1678_vm8, %v767_v3  ;;  %v783_v3 = vld [vmem:[%s4623_s14 + $0x8] sm:$0xff] }
 0x55b   : > { %2091 = vmatprep.mubr.f32.mxu1 %v3773_v56  ;;  %v3227_v51 = vpack.c.bf16 %v783_v3, %v782_v2 }
 0x629   : > { %v1847_v34 = vpop.f32.mrb[14].mxu1 }
 0x62a   : > { %v1849_v36 = vpop.f32.mrb[15].mxu1 }
 0x62b   : > { %3013 = vmatprep.subr.msk.mxu0 %vm833_vm0, %v1849_v36 }
 0x62c   : > { %3014 = vmatpush1.msk.msra.mxu0 %vm833_vm0, %v1847_v34 }
 0x62d   : > { %3015 = vmatmul.mubr.msk.f32.vlgmr.msra.gmra.mrb[6].mxu0 %vm826_vm1, %v782_v2  ;;  %v2010_v6 = vpop.f32.mrb[16].mxu1  ;;  %3217 = vmatprep.subr.msk.bf16.mxu0 %vm4372_vm7, %v3215_v33 }
 0x62e   : > { %v2012_v0 = vpop.f32.mrb[17].mxu1  ;;  %1934 = vmatprep.mubr.f32.mxu0 %v3773_v56  ;;  %3220 = vmatpush1.bf16.msk.msra.mxu0 %vm4372_vm7, %v3218_v35 }
 0x62f   : > { %3020 = vmatprep.subr.msk.mxu1 %vm833_vm0, %v2012_v0 }
 0x630   : > { %3021 = vmatpush1.msk.msra.mxu1 %vm833_vm0, %v2010_v6 }
 0x631   : > { %3016 = vmatmul.mubr.msk.f32.gmra.mrb[8].mxu0 %vm826_vm1, %v783_v3  ;;  %3022 = vmatmul.mubr.msk.f32.vlgmr.msra.gmra.mrb[18].mxu1 %vm826_vm1, %v784_v37 }
 0x632   : > { %2097 = vmatprep.mubr.f32.mxu1 %v3773_v56  ;;  %2181 = vmatprep.mubr.f32.mxu0 %v3773_v56 }
 0x633   : > { %3223 = vmatprep.subr.msk.bf16.mxu1 %vm4372_vm7, %v4369_v8 }
 0x634   : > { %3226 = vmatpush1.bf16.msk.msra.mxu1 %vm4372_vm7, %v3200_v12  ;;  %v2591_v12 = vlaneseq }
 0x635   : > { %3023 = vmatmul.mubr.msk.f32.gmra.mrb[20].mxu1 %vm826_vm1, %v785_v38  ;;  %3026 = vmatmul.mubr.msk.f32.vlgmr.msra.gmra.mrb[10].mxu0 %vm1678_vm8, %v773_v7 }
 0x636   : > { %2338 = vmatprep.mubr.f32.mxu1 %v3773_v56  ;;  %2258 = vmatprep.mubr.f32.mxu0 %v3773_v56  ;;  %v2592_v15 = vshrl.u32 %v2591_v12, 7  ;;  %v2595_v16 = vand.u32 127, %v2591_v12 }
 0x638   : > { %vm2596_vm11 = vcmp.eq.s32.totalorder %v2592_v15, %v2595_v16  ;;  %v2593_v17 = vadd.s32 8, %v2592_v15 }
 0x639   : > { %3033 = vmatmul.mubr.msk.f32.vlgmr.msra.gmra.mrb[22].mxu1 %vm1678_vm8, %v769_v4 }
 0x63a   : > { %2415 = vmatprep.mubr.f32.mxu1 %v3773_v56  ;;  %vm2597_vm12 = vcmp.eq.s32.totalorder %v2593_v17, %v2595_v16 }
 0x700   : > { %v1930_v39 = vpop.f32.mrb[6].mxu0 }
 0x701   : > { %v1932_v40 = vpop.f32.mrb[7].mxu0 }
 0x704   : > { %v2093_v41 = vpop.f32.mrb[18].mxu1  ;;  %v1936_v42 = vpop.f32.mrb[8].mxu0 }
 0x705   : > { %v2104_v43 = vmul.f32 %v2093_v41, %v1930_v39  ;;  %v2095_v44 = vpop.f32.mrb[19].mxu1  ;;  %v1938_v45 = vpop.f32.mrb[9].mxu0 }
 0x706   : > { %v2105_v5 = vmul.f32 %v2095_v44, %v1932_v40 }
 0x708   : > { %v2183_v46 = vpop.f32.mrb[10].mxu0  ;;  %v2099_v7 = vpop.f32.mrb[20].mxu1 }
 0x709   : > { %v2106_v47 = vmul.f32 %v2099_v7, %v1936_v42  ;;  %v2185_v48 = vpop.f32.mrb[11].mxu0  ;;  %v2101_v49 = vpop.f32.mrb[21].mxu1 }
 0x70a   : > { %v2107_v50 = vmul.f32 %v2101_v49, %v1938_v45  ;;  %3027 = vmatprep.subr.msk.mxu0 %vm833_vm0, %v2185_v48 }
 0x70b   : > { %3028 = vmatpush1.msk.msra.mxu0 %vm833_vm0, %v2183_v46 }
 0x70c   : > { %3029 = vmatmul.mubr.msk.f32.vlgmr.msra.gmra.mrb[12].mxu0 %vm826_vm1, %v782_v2  ;;  %v2340_v1 = vpop.f32.mrb[22].mxu1  ;;  %3157 = vmatprep.subr.msk.mxu0 %vm833_vm0, %v4381_v13 }
 0x70d   : > { %v2342_v4 = vpop.f32.mrb[23].mxu1  ;;  %3158 = vmatpush3.msk.msra.mxu0 %vm833_vm0, %v4381_v13  ;;  %2264 = vmatprep.mubr.f32.mxu0 %v3773_v56 }
 0x70e   : > { %3034 = vmatprep.subr.msk.mxu1 %vm833_vm0, %v2342_v4 }
 0x70f   : > { %3035 = vmatpush1.msk.msra.mxu1 %vm833_vm0, %v2340_v1 }
 0x710   : > { %3030 = vmatmul.mubr.msk.f32.gmra.mrb[14].mxu0 %vm826_vm1, %v783_v3  ;;  %3036 = vmatmul.mubr.msk.f32.vlgmr.msra.gmra.mrb[24].mxu1 %vm826_vm1, %v784_v37 }
 0x711   : > { %2421 = vmatprep.mubr.f32.mxu1 %v3773_v56  ;;  %3159 = vmatprep.mubr.msk.f32.mxu0 %vm826_vm1, %v784_v37 }
 0x712   : > { %3229 = vmatprep.subr.msk.bf16.mxu1 %vm3228_vm9, %v3227_v51 }
 0x714   : > { %3037 = vmatmul.mubr.msk.f32.gmra.mrb[26].mxu1 %vm826_vm1, %v785_v38  ;;  %3160 = vmatmul.mubr.msk.f32.vlgmr.msra.gmra.mrb[16].mxu0 %vm826_vm1, %v785_v38 }
 0x715   : > { %3047 = vmatprep.mubr.msk.f32.mxu0 %vm1601_vm4, %v2105_v5 }
 0x716   : > { %3232 = vmatpush3.bf16.xpose.msk.msra.mxu1 %vm3228_vm9, %v3227_v51 }
 0x7df   : > { %v2260_v52 = vpop.f32.mrb[12].mxu0 }
 0x7e0   : > { %v2262_v53 = vpop.f32.mrb[13].mxu0 }
 0x7e3   : > { %v2417_v54 = vpop.f32.mrb[24].mxu1  ;;  %v2266_v55 = vpop.f32.mrb[14].mxu0 }
 0x7e4   : > { %v2428_v57 = vmul.f32 %v2417_v54, %v2260_v52  ;;  %v2419_v56 = vpop.f32.mrb[25].mxu1  ;;  %v2268_v58 = vpop.f32.mrb[15].mxu0 }
 0x7e5   : > { %v2429_v59 = vmul.f32 %v2419_v56, %v2262_v53 }
 0x7e7   : > { %v2423_v60 = vpop.f32.mrb[26].mxu1  ;;  %v3161_v61 = vpop.f32.mrb[16].mxu0 }
 0x7e8   : > { %v2430_v62 = vmul.f32 %v2423_v60, %v2266_v55  ;;  %v2425_v63 = vpop.f32.mrb[27].mxu1  ;;  %v2501_v8 = vpop.f32.mrb[17].mxu0 }
 0x7e9   : > { %v2431_v9 = vmul.f32 %v2425_v63, %v2268_v58  ;;  %3166 = vmatprep.mubr.msk.f32.mxu1 %vm826_vm1, %v2501_v8 }
 0x7ea   : > { %v3236_v10 = vpack.c.bf16 %v2430_v62, %v2428_v57  ;;  %3167 = vmatmul.mubr.msk.f32.vlgmr.msra.gmra.mrb[28].mxu1 %vm826_vm1, %v3161_v61 }
 0x7eb   : > { %v3233_v11 = vpack.c.bf16 %v2431_v9, %v2429_v59 }
 0x7ed   : > { %3235 = vmatprep.subr.msk.bf16.mxu0 %vm3234_vm10, %v3233_v11 }
 0x7ee   : > { %3237 = vmatpush1.bf16.xpose.msra.mxu0 %v3236_v10 }
 0x7f5   : > { %2677 = vmatmul.mubr.f32.vlgmr.msra.gmra.mrb[18].mxu0 %v2104_v43 }
 0x7f6   : > { %3048 = vmatprep.mubr.msk.f32.mxu0 %vm1601_vm4, %v2107_v50 }
 0x7f9   : > { %2682 = vmatmul.mubr.f32.gmra.mrb[20].mxu0 %v2106_v47 }
 0x8bd   : > { %v3168_v13 = vpop.f32.mrb[28].mxu1 }
 0x8be   : > { %v2582_v14 = vpop.f32.mrb[29].mxu1  ;;  %v2599_v22 = vsel %vm2597_vm12, %v3168_v13, 0.0 }
 0x8bf   : > { %v2598_v18 = vsel %vm2596_vm11, %v2582_v14, 0.0 }
 0x8c8   : > { %v2678_v19 = vpop.f32.mrb[18].mxu0 }
 0x8c9   : > { %v2679_v20 = vadd.f32 %v2678_v19, %v2598_v18  ;;  %v2680_v21 = vpop.f32.mrb[19].mxu0 }
 0x8cb   : > { %2687 = vst.msk [vmem:[%s761_s3] sm:$0xff] %vm1601_vm4, %v2679_v20 }
 0x8cc   : > { %v2683_v23 = vpop.f32.mrb[20].mxu0 }
 0x8cd   : > { %v2684_v24 = vadd.f32 %v2683_v23, %v2599_v22  ;;  %v2685_v25 = vpop.f32.mrb[21].mxu0 }
 0x8cf   : > { %2688 = vst.msk [vmem:[%s761_s3 + $0x8] sm:$0xff] %vm1601_vm4, %v2684_v24 }
 0x8d0   : > { %3682 = shalt.err (!%p3679_p6)
}
 0x8d1   : > { %s3683_s25 = scalar_lea.hbm %s4477_s1, 256  ;;  %s3687_s21 = scalar_lea.hbm %s4626_s27, 512 }
 0x8d2   : > { %p3684_p9 = scmp.ne.s32.totalorder %s4477_s1, %s3683_s25  ;;  %p3688_p7 = scmp.lt.u32.totalorder %s4477_s1, %s4626_s27 }
 0x8d3   : > { %p3689_p10 = scmp.lt.u32.totalorder %s3687_s21, %s3683_s25  ;;  %p3691_p2 = scmp.lt.u32.totalorder %s3683_s25, %s4477_s1 }
 0x8d4   : > { %p3685_p12 = pnand %p3684_p9, %p4627_p13 }
 0x8d5   : > { %p3690_p8 = por %p3689_p10, %p3688_p7 }
 0x8d6   : > { %p3686_p3 = pneg %p3685_p12 }
 0x8d7   : > { %p3692_p11 = por %p3691_p2, %p3690_p8 }
 0x8d9   : > { %p3693_p0 = pnand %p3692_p11, %p3686_p3 }
 0x8db   : > { %3696 = shalt.err (!%p3693_p0)
}
 0x8dc   : > { %s3777_s15 = smov 128   ;;  %s3778_s12 = smov 8  }
 0x8dd   : > { %3264 = dma.vmem_to_hbm [thread:$0]  (%p4627_p13), %s4472_s11, 256, %s4477_s1, %s2690_s18, %s3777_s15, %s3777_s15, %s3778_s12  }
 0x8de PF: > { %s4628_s8 = sld [smem:[#allocation28_spill]]  ;;  %s4629_s23 = sld [smem:[#allocation31_spill]] }
 0x8df   : > { %p4631_p1 = scmp.ge.s32.totalorder %s3759_s16, 2 }
 0x8e4   : > { %s2718_s28 = sand.u32 1, %s4628_s8   ;;  %p4630_p5 = scmp.ne.s32.totalorder %s4629_s23, 0 }
 0x8e5   : > { %s2719_s19 = scalar_lea.sflag [#allocation4], %s2718_s28 }
 0x8e6   : > { %p3299_p4 = pnand %p4631_p1, %p4630_p5 }
 0x8e8   : > { %3742 = dma.done.wait (!%p3299_p4), %s2719_s19, 256  }
 0x8e9   : > { %3744 = vsyncadd (!%p3299_p4), %s2719_s19, 4294967040  ;;  %s4632_s16 = sld [smem:[#allocation32_spill]]  ;;  %s4633_s26 = sld [smem:[#allocation29_spill]] }
 0x8ea   : > { %s4634_s15 = sld [smem:[#allocation33_spill]]  ;;  %s4635_s29 = smov %s3751_s30 }
 0x8ef   : > { %p40_p6 = scmp.ge.s32.totalorder %s4632_s16, 4   ;;  %s4636_s30 = smov %s4633_s26 }
 0x8f1   :  { %42 = sbr.rel (!%p40_p6) target bundleno = 24 (0x18), region = 214 }
 0x8f8   :  { %2724 = vsyncpa [#allocation3], 1 }
 0x8f9   :  { %2726 = vsyncpa [#allocation3 + $0x1], 1 }
 0x8fa   :  { %2727 = vsyncpa [#allocation6], 1 }
 0x8fb   :  { %2729 = vsyncpa [#allocation6 + $0x1], 1 }
 0x8fc   :  { %2730 = vsyncpa [#allocation9], 1 }
 0x8fd   :  { %2732 = vsyncpa [#allocation9 + $0x1], 1 }
 0x8fe   :  { %2733 = vsyncpa [#allocation12], 1 }
 0x8ff   :  { %2735 = vsyncpa [#allocation12 + $0x1], 1 }
 0x900   :  { %2736 = vsyncpa [#allocation15], 1 }
 0x901   :  { %2738 = vsyncpa [#allocation15 + $0x1], 1 }
 0x902   :  { %2739 = vsyncpa [#allocation18], 1 }
 0x903   :  { %2740 = vsyncpa [#allocation4], 1 }
 0x904   :  { %2742 = vsyncpa [#allocation4 + $0x1], 1 }

</bundles_post_ra>
